<compile_context>
chip_gen: v7x
topology: tpu7x:2x2x1
jax: 0.10.0
libtpu: 0.0.40
codegen_flags: <defaults>
</compile_context>

<pallas_src>
import math

import jax
import jax.numpy as jnp
from jax.experimental import pallas as pl
from jax.experimental.pallas import tpu as pltpu


_VMEM_LIMIT_BYTES = 48 * 1024 * 1024   # explicit scoped-VMEM limit (safe on v7x's 64 MiB)
_TILE_VMEM_BUDGET = 24 * 1024 * 1024   # per-grid-step working-set target for tile choice


def _round_up(x: int, m: int) -> int:
    return ((x + m - 1) // m) * m


def _choose_tiles(n0: int, B: int, R: int, M: int, max_tile_rows: int):
    """Pick (TR, TM): leading-image-axis row tile and trajectory-point tile."""
    TM = 128 if M <= 128 else 256                      # lane-dense, multiple of 128
    TR = min(_round_up(n0, 8), _round_up(max(max_tile_rows, 8), 8))

    def step_bytes(tr):
        img = 2 * 2 * B * tr * R * 4                   # re+im image tiles, double-buffered
        a = 2 * B * tr * TM * 4                        # stage-1 (trailing-axes) partials
        f1 = 2 * R * TM * 4                            # trailing-axes Fourier factor
        ax0 = 2 * tr * TM * 4                          # leading-axis cos/sin
        io = (2 * 2 + 2) * B * TM * 4                  # output blocks + accumulators
        return img + a + f1 + ax0 + io

    while TR > 8 and step_bytes(TR) > _TILE_VMEM_BUDGET:
        TR = _round_up(TR // 2, 8)
    return TR, TM


def _make_nufft_kernel(scale: float, im_size: tuple, B: int, R: int, TR: int, TM: int):
    """Per-(n, m_tile, r_tile) kernel.

    Refs:
      omega_ref    : (1, d, TM)    f32  lane-dense trajectory tile (radians/voxel)
      img_re/im    : (1, B, TR, R) f32  image rows tile (leading axis tiled, rest flat)
      out_re/im    : (1, B, TM)    f32  k-space tile (written on last r step)
      acc_re/im    : (B, TM)       f32  VMEM accumulators over the r (row-tile) axis
    """
    n0 = im_size[0]
    trailing = im_size[1:]

    def kernel(omega_ref, img_re_ref, img_im_ref, out_re_ref, out_im_ref,
               acc_re, acc_im):
        r_idx = pl.program_id(2)
        n_r = pl.num_programs(2)

        @pl.when(r_idx == 0)
        def _init():
            acc_re[...] = jnp.zeros_like(acc_re)
            acc_im[...] = jnp.zeros_like(acc_im)

        omega = omega_ref[0]                               # (d, TM)

        # ---- separable factor over the trailing image axes: F1 = (R, TM) ----
        cs, sn = [], []
        for ax, n_i in enumerate(trailing, start=1):
            x = jax.lax.broadcasted_iota(jnp.int32, (n_i, TM), 0).astype(jnp.float32)
            ph = (x - float(n_i // 2)) * omega[ax:ax + 1, :]
            cs.append(jnp.cos(ph))
            sn.append(jnp.sin(ph))
        f1_re = cs[0]
        f1_im = -sn[0]
        dim = trailing[0]
        for ax in range(1, len(trailing)):                 # only runs for d >= 3
            n_i = trailing[ax]
            a_re = f1_re.reshape(dim, 1, TM)
            a_im = f1_im.reshape(dim, 1, TM)
            b_re = cs[ax].reshape(1, n_i, TM)
            b_im = (-sn[ax]).reshape(1, n_i, TM)
            f1_re = (a_re * b_re - a_im * b_im).reshape(dim * n_i, TM)
            f1_im = (a_re * b_im + a_im * b_re).reshape(dim * n_i, TM)
            dim *= n_i
        # f1_re/f1_im: (R, TM) = exp(-j * sum_{i>=1} coord_i * omega_i)

        # ---- stage 1: contract the trailing image dims on the MXU ----
        img_re = img_re_ref[0].reshape(B * TR, R)
        img_im = img_im_ref[0].reshape(B * TR, R)
        a_re = (jnp.dot(img_re, f1_re, preferred_element_type=jnp.float32)
                - jnp.dot(img_im, f1_im, preferred_element_type=jnp.float32))
        a_im = (jnp.dot(img_re, f1_im, preferred_element_type=jnp.float32)
                + jnp.dot(img_im, f1_re, preferred_element_type=jnp.float32))
        a_re = a_re.reshape(B, TR, TM)
        a_im = a_im.reshape(B, TR, TM)

        # ---- stage 2: leading-axis factor, weighted reduce over the row tile ----
        row0 = (r_idx * TR - (n0 // 2)).astype(jnp.float32)
        rloc = jax.lax.broadcasted_iota(jnp.int32, (TR, TM), 0).astype(jnp.float32)
        ph0 = (rloc + row0) * omega[0:1, :]                # (TR, TM)
        c0 = jnp.cos(ph0)[None, :, :]
        s0 = jnp.sin(ph0)[None, :, :]
        # (a_re + j a_im) * (c0 - j s0), summed over the row tile
        acc_re[...] += jnp.sum(a_re * c0 + a_im * s0, axis=1)
        acc_im[...] += jnp.sum(a_im * c0 - a_re * s0, axis=1)

        @pl.when(r_idx == n_r - 1)
        def _done():
            out_re_ref[0] = (acc_re[...] * scale).astype(out_re_ref.dtype)
            out_im_ref[0] = (acc_im[...] * scale).astype(out_im_ref.dtype)

    return kernel


class TorchKbNufftPallas:
    """JAX/Pallas equivalent of torchkb_nufft (forward pass)."""

    def __init__(self, im_size, oversamp: float = 2.0, numpoints: int = 6,
                 max_tile_rows: int = 512):
        self.im_size = tuple(im_size)
        self.oversamp = float(oversamp)
        self.numpoints = int(numpoints)   # unused (exact NUFFT), kept for API parity
        self.max_tile_rows = int(max_tile_rows)
        self.im_size_os = tuple(round(i * oversamp) for i in self.im_size)

    def rescale_trajectory(self, trj):
        # trj in cycles (k_i in [-N_i/2, N_i/2]) -> omega in radians/voxel ([-pi, pi])
        im_size_arr = jnp.asarray(self.im_size, dtype=trj.dtype)
        return jnp.pi * trj / (im_size_arr / 2.0)

    def forward(self, img, trj):
        """img: complex64 (N, *img_batch, *im_size); trj: float32 (N, *trj_batch, d)
        already rescaled to radians/voxel. Returns complex64 (N, *img_batch, *trj_batch)."""
        im_size = self.im_size
        d = trj.shape[-1]
        assert d == len(im_size)
        assert d >= 2  # TODO(synk): 1D images not supported by the separable-axis kernel
        N = trj.shape[0]
        img_batch = img.shape[1:img.ndim - d]
        trj_batch = trj.shape[1:-1]

        B = int(math.prod(img_batch)) if img_batch else 1
        M = int(math.prod(trj_batch)) if trj_batch else 1
        n0 = im_size[0]
        R = int(math.prod(im_size[1:]))
        P = n0 * R

        TR, TM = _choose_tiles(n0, B, R, M, self.max_tile_rows)
        n0_pad = _round_up(n0, TR)
        M_pad = _round_up(M, TM)

        # lane-dense trajectory: (N, d, M_pad)
        omega = trj.reshape(N, M, d).astype(jnp.float32)
        omega = jnp.transpose(omega, (0, 2, 1))
        if M_pad != M:
            omega = jnp.pad(omega, ((0, 0), (0, 0), (0, M_pad - M)))

        img_flat = img.reshape(N, B, n0, R)
        img_re = jnp.real(img_flat).astype(jnp.float32)
        img_im = jnp.imag(img_flat).astype(jnp.float32)
        if n0_pad != n0:
            pad = ((0, 0), (0, 0), (0, n0_pad - n0), (0, 0))
            img_re = jnp.pad(img_re, pad)
            img_im = jnp.pad(img_im, pad)

        grid = (N, M_pad // TM, n0_pad // TR)
        # KbNufft(norm='ortho') divides by sqrt(prod(grid_size)); module multiplies by oversamp.
        scale = self.oversamp / math.sqrt(math.prod(self.im_size_os))

        kernel = _make_nufft_kernel(scale=scale, im_size=im_size, B=B, R=R, TR=TR, TM=TM)

        n_r = n0_pad // TR
        n_m = M_pad // TM
        flops = int(8 * N * B * P * M_pad)
        transcendentals = int(2 * N * M_pad * (n0_pad + n_r * sum(im_size[1:])))
        bytes_accessed = int(2 * N * B * n0_pad * R * 4 * n_m
                             + N * d * M_pad * 4 * n_r
                             + 2 * N * B * M_pad * 4)

        out_re, out_im = pl.pallas_call(
            kernel,
            out_shape=(jax.ShapeDtypeStruct((N, B, M_pad), jnp.float32),
                       jax.ShapeDtypeStruct((N, B, M_pad), jnp.float32)),
            grid_spec=pltpu.PrefetchScalarGridSpec(
                num_scalar_prefetch=0,
                grid=grid,
                in_specs=[
                    pl.BlockSpec((1, d, TM), lambda n, m, r: (n, 0, m)),       # omega
                    pl.BlockSpec((1, B, TR, R), lambda n, m, r: (n, 0, r, 0)),  # img real
                    pl.BlockSpec((1, B, TR, R), lambda n, m, r: (n, 0, r, 0)),  # img imag
                ],
                out_specs=[
                    pl.BlockSpec((1, B, TM), lambda n, m, r: (n, 0, m)),
                    pl.BlockSpec((1, B, TM), lambda n, m, r: (n, 0, m)),
                ],
                scratch_shapes=[pltpu.VMEM((B, TM), jnp.float32),
                                pltpu.VMEM((B, TM), jnp.float32)],
            ),
            compiler_params=pltpu.CompilerParams(
                dimension_semantics=("parallel", "parallel", "arbitrary"),
                vmem_limit_bytes=_VMEM_LIMIT_BYTES),
            cost_estimate=pl.CostEstimate(flops=flops,
                                          transcendentals=transcendentals,
                                          bytes_accessed=bytes_accessed),
        )(omega, img_re, img_im)

        ksp = jax.lax.complex(out_re[:, :, :M], out_im[:, :, :M])  # complex64
        return ksp.reshape((N, *img_batch, *trj_batch))


def _reference_forward(img, trj, im_size, oversamp):
    """Plain-JAX reference of the same exact NUFFT (for a correctness check)."""
    N = trj.shape[0]
    d = trj.shape[-1]
    img_batch = img.shape[1:img.ndim - d]
    trj_batch = trj.shape[1:-1]
    B = int(math.prod(img_batch)) if img_batch else 1
    M = int(math.prod(trj_batch)) if trj_batch else 1
    P = int(math.prod(im_size))

    axes = [jnp.arange(n, dtype=jnp.float32) - (n // 2) for n in im_size]
    grids = jnp.meshgrid(*axes, indexing="ij")
    coord = jnp.stack([g.reshape(-1) for g in grids], axis=-1)  # (P, d)

    omega = trj.reshape(N, M, d).astype(jnp.float32)
    phase = jnp.einsum("nmd,pd->nmp", omega, coord,
                       precision=jax.lax.Precision.HIGHEST)
    F = jnp.exp(-1j * phase.astype(jnp.complex64))              # (N, M, P)
    img_flat = img.reshape(N, B, P)
    ksp = jnp.einsum("nbp,nmp->nbm", img_flat, F,
                     precision=jax.lax.Precision.HIGHEST)

    im_size_os = tuple(round(i * oversamp) for i in im_size)
    scale = oversamp / math.sqrt(math.prod(im_size_os))
    return (ksp * scale).reshape((N, *img_batch, *trj_batch))


if __name__ == "__main__":
    key = jax.random.PRNGKey(0)
    k_img_re, k_img_im, k_trj = jax.random.split(key, 3)

    im_size = (16, 16)          # 2D image
    oversamp = 2.0
    numpoints = 6
    N = 2                       # batch dim
    img_batch = (4,)            # e.g. coils
    trj_batch = (6, 25)         # M = 150 -> exercises trajectory padding to TM

    # max_tile_rows=8 forces 2 reduction steps over the leading image axis,
    # exercising the VMEM accumulator path.
    model = TorchKbNufftPallas(im_size, oversamp=oversamp, numpoints=numpoints,
                               max_tile_rows=8)

    img = jax.lax.complex(
        jax.random.normal(k_img_re, (N, *img_batch, *im_size), dtype=jnp.float32),
        jax.random.normal(k_img_im, (N, *img_batch, *im_size), dtype=jnp.float32),
    )  # complex64

    # trajectory in cycles: k_i in [-N_i/2, N_i/2]
    half = jnp.asarray([s / 2.0 for s in im_size], dtype=jnp.float32)
    trj_cycles = jax.random.uniform(
        k_trj, (N, *trj_batch, len(im_size)), dtype=jnp.float32,
        minval=-1.0, maxval=1.0) * half
    trj_omega = model.rescale_trajectory(trj_cycles)   # radians/voxel (what KbNufft takes)

    ksp = model.forward(img, trj_omega)
    ksp = jax.block_until_ready(ksp)

    assert ksp.shape == (N, *img_batch, *trj_batch), ksp.shape
    assert ksp.dtype == jnp.complex64, ksp.dtype

    ksp_ref = jax.block_until_ready(_reference_forward(img, trj_omega, im_size, oversamp))
    max_err = float(jnp.max(jnp.abs(ksp - ksp_ref)))
    denom = float(jnp.max(jnp.abs(ksp_ref)))
    assert max_err / max(denom, 1e-6) < 1e-3, (max_err, denom)

    print("KERNEL_OK")
</pallas_src>

<mosaic_0001>
module attributes {stable_mosaic.version = 11 : i64} {
  func.func @kernel(%arg0: i32, %arg1: i32, %arg2: i32, %arg3: memref<1x2x256xf32, #tpu.memory_space<vmem>>, %arg4: memref<1x4x8x16xf32, #tpu.memory_space<vmem>>, %arg5: memref<1x4x8x16xf32, #tpu.memory_space<vmem>>, %arg6: memref<1x4x256xf32, #tpu.memory_space<vmem>>, %arg7: memref<1x4x256xf32, #tpu.memory_space<vmem>>, %arg8: memref<4x256xf32, #tpu.memory_space<vmem>>, %arg9: memref<4x256xf32, #tpu.memory_space<vmem>>) attributes {dimension_semantics = [#tpu.dimension_semantics<parallel>, #tpu.dimension_semantics<parallel>, #tpu.dimension_semantics<arbitrary>], iteration_bounds = array<i64: 2, 1, 2>, scalar_prefetch = 0 : i64, scratch_operands = 2 : i64, tpu.core_type = #tpu.core_type<tc>, window_params = [{transform_indices = @transform_0, window_bounds = array<i64: 1, 2, 256>}, {transform_indices = @transform_1, window_bounds = array<i64: 1, 4, 8, 16>}, {transform_indices = @transform_2, window_bounds = array<i64: 1, 4, 8, 16>}, {transform_indices = @transform_3, window_bounds = array<i64: 1, 4, 256>}, {transform_indices = @transform_4, window_bounds = array<i64: 1, 4, 256>}]} {
    %c0_i32 = arith.constant 0 : i32
    %0 = arith.cmpi eq, %arg2, %c0_i32 : i32
    %1 = arith.extui %0 : i1 to i32
    %c0_i32_0 = arith.constant 0 : i32
    %2 = arith.cmpi ne, %1, %c0_i32_0 : i32
    scf.if %2 {
      %cst_28 = arith.constant 0.000000e+00 : f32
      %65 = vector.broadcast %cst_28 : f32 to vector<4x256xf32>
      %c0_29 = arith.constant 0 : index
      %c0_30 = arith.constant 0 : index
      %66 = vector.load %arg8[%c0_29, %c0_30] : memref<4x256xf32, #tpu.memory_space<vmem>>, vector<4x256xf32>
      tpu.vector_store %arg8[%c0_29, %c0_30], %65 {strides = array<i32>} : memref<4x256xf32, #tpu.memory_space<vmem>>, vector<4x256xf32>,
      %cst_31 = arith.constant 0.000000e+00 : f32
      %67 = vector.broadcast %cst_31 : f32 to vector<4x256xf32>
      %c0_32 = arith.constant 0 : index
      %c0_33 = arith.constant 0 : index
      %68 = vector.load %arg9[%c0_32, %c0_33] : memref<4x256xf32, #tpu.memory_space<vmem>>, vector<4x256xf32>
      tpu.vector_store %arg9[%c0_32, %c0_33], %67 {strides = array<i32>} : memref<4x256xf32, #tpu.memory_space<vmem>>, vector<4x256xf32>,
    } else {
    }
    %c0 = arith.constant 0 : index
    %c0_1 = arith.constant 0 : index
    %c0_2 = arith.constant 0 : index
    %3 = vector.load %arg3[%c0, %c0_1, %c0_2] : memref<1x2x256xf32, #tpu.memory_space<vmem>>, vector<1x2x256xf32>
    %4 = vector.shape_cast %3 : vector<1x2x256xf32> to vector<2x256xf32>
    %5 = tpu.iota {dimensions = array<i32: 0>} : vector<16x256xi32>
    %6 = arith.sitofp %5 : vector<16x256xi32> to vector<16x256xf32>
    %cst = arith.constant 8.000000e+00 : f32
    %7 = vector.broadcast %cst : f32 to vector<16x256xf32>
    %8 = arith.subf %6, %7 : vector<16x256xf32>
    %9 = vector.extract_strided_slice %4 {offsets = [1, 0], sizes = [1, 256], strides = [1, 1]} : vector<2x256xf32> to vector<1x256xf32>
    %10 = vector.broadcast %9 : vector<1x256xf32> to vector<16x256xf32>
    %11 = arith.mulf %8, %10 : vector<16x256xf32>
    %12 = math.cos %11 : vector<16x256xf32>
    %13 = math.sin %11 : vector<16x256xf32>
    %cst_3 = arith.constant 0.000000e+00 : f32
    %14 = vector.broadcast %cst_3 : f32 to vector<16x256xf32>
    %15 = arith.subf %14, %13 : vector<16x256xf32>
    %c0_4 = arith.constant 0 : index
    %c0_5 = arith.constant 0 : index
    %c0_6 = arith.constant 0 : index
    %c0_7 = arith.constant 0 : index
    %16 = vector.load %arg4[%c0_4, %c0_5, %c0_6, %c0_7] : memref<1x4x8x16xf32, #tpu.memory_space<vmem>>, vector<1x4x8x16xf32>
    %17 = vector.shape_cast %16 : vector<1x4x8x16xf32> to vector<4x8x16xf32>
    %18 = vector.shape_cast %17 : vector<4x8x16xf32> to vector<32x16xf32>
    %c0_8 = arith.constant 0 : index
    %c0_9 = arith.constant 0 : index
    %c0_10 = arith.constant 0 : index
    %c0_11 = arith.constant 0 : index
    %19 = vector.load %arg5[%c0_8, %c0_9, %c0_10, %c0_11] : memref<1x4x8x16xf32, #tpu.memory_space<vmem>>, vector<1x4x8x16xf32>
    %20 = vector.shape_cast %19 : vector<1x4x8x16xf32> to vector<4x8x16xf32>
    %21 = vector.shape_cast %20 : vector<4x8x16xf32> to vector<32x16xf32>
    %cst_12 = arith.constant dense<0.000000e+00> : vector<32x256xf32>
    %22 = tpu.matmul %18, %12, %cst_12 {dimension_numbers = #tpu.dot_dimension_numbers<[1], [0], [0], [1], [0, 0, 1, 1], [], []>} : vector<32x16xf32>, vector<16x256xf32>, vector<32x256xf32> -> vector<32x256xf32>
    %cst_13 = arith.constant dense<0.000000e+00> : vector<32x256xf32>
    %23 = tpu.matmul %21, %15, %cst_13 {dimension_numbers = #tpu.dot_dimension_numbers<[1], [0], [0], [1], [0, 0, 1, 1], [], []>} : vector<32x16xf32>, vector<16x256xf32>, vector<32x256xf32> -> vector<32x256xf32>
    %24 = arith.subf %22, %23 : vector<32x256xf32>
    %cst_14 = arith.constant dense<0.000000e+00> : vector<32x256xf32>
    %25 = tpu.matmul %18, %15, %cst_14 {dimension_numbers = #tpu.dot_dimension_numbers<[1], [0], [0], [1], [0, 0, 1, 1], [], []>} : vector<32x16xf32>, vector<16x256xf32>, vector<32x256xf32> -> vector<32x256xf32>
    %cst_15 = arith.constant dense<0.000000e+00> : vector<32x256xf32>
    %26 = tpu.matmul %21, %12, %cst_15 {dimension_numbers = #tpu.dot_dimension_numbers<[1], [0], [0], [1], [0, 0, 1, 1], [], []>} : vector<32x16xf32>, vector<16x256xf32>, vector<32x256xf32> -> vector<32x256xf32>
    %27 = arith.addf %25, %26 : vector<32x256xf32>
    %28 = vector.shape_cast %24 : vector<32x256xf32> to vector<4x8x256xf32>
    %29 = vector.shape_cast %27 : vector<32x256xf32> to vector<4x8x256xf32>
    %c8_i32 = arith.constant 8 : i32
    %30 = arith.muli %arg2, %c8_i32 : i32
    %c8_i32_16 = arith.constant 8 : i32
    %31 = arith.subi %30, %c8_i32_16 : i32
    %32 = arith.sitofp %31 : i32 to f32
    %33 = tpu.iota {dimensions = array<i32: 0>} : vector<8x256xi32>
    %34 = arith.sitofp %33 : vector<8x256xi32> to vector<8x256xf32>
    %35 = vector.broadcast %32 : f32 to vector<8x256xf32>
    %36 = arith.addf %34, %35 : vector<8x256xf32>
    %37 = vector.extract_strided_slice %4 {offsets = [0, 0], sizes = [1, 256], strides = [1, 1]} : vector<2x256xf32> to vector<1x256xf32>
    %38 = vector.broadcast %37 : vector<1x256xf32> to vector<8x256xf32>
    %39 = arith.mulf %36, %38 : vector<8x256xf32>
    %40 = math.cos %39 : vector<8x256xf32>
    %41 = vector.shape_cast %40 : vector<8x256xf32> to vector<1x8x256xf32>
    %42 = math.sin %39 : vector<8x256xf32>
    %43 = vector.shape_cast %42 : vector<8x256xf32> to vector<1x8x256xf32>
    %c0_17 = arith.constant 0 : index
    %c0_18 = arith.constant 0 : index
    %44 = vector.load %arg8[%c0_17, %c0_18] : memref<4x256xf32, #tpu.memory_space<vmem>>, vector<4x256xf32>
    %45 = vector.broadcast %41 : vector<1x8x256xf32> to vector<4x8x256xf32>
    %46 = arith.mulf %28, %45 : vector<4x8x256xf32>
    %47 = vector.broadcast %43 : vector<1x8x256xf32> to vector<4x8x256xf32>
    %48 = arith.mulf %29, %47 : vector<4x8x256xf32>
    %49 = arith.addf %46, %48 : vector<4x8x256xf32>
    %cst_19 = arith.constant dense<0.000000e+00> : vector<4x256xf32>
    %50 = vector.multi_reduction <add>, %49, %cst_19 [1] : vector<4x8x256xf32> to vector<4x256xf32>
    %51 = arith.addf %44, %50 : vector<4x256xf32>
    %c0_20 = arith.constant 0 : index
    %c0_21 = arith.constant 0 : index
    %52 = vector.load %arg8[%c0_20, %c0_21] : memref<4x256xf32, #tpu.memory_space<vmem>>, vector<4x256xf32>
    tpu.vector_store %arg8[%c0_20, %c0_21], %51 {strides = array<i32>} : memref<4x256xf32, #tpu.memory_space<vmem>>, vector<4x256xf32>,
    %c0_22 = arith.constant 0 : index
    %c0_23 = arith.constant 0 : index
    %53 = vector.load %arg9[%c0_22, %c0_23] : memref<4x256xf32, #tpu.memory_space<vmem>>, vector<4x256xf32>
    %54 = vector.broadcast %41 : vector<1x8x256xf32> to vector<4x8x256xf32>
    %55 = arith.mulf %29, %54 : vector<4x8x256xf32>
    %56 = vector.broadcast %43 : vector<1x8x256xf32> to vector<4x8x256xf32>
    %57 = arith.mulf %28, %56 : vector<4x8x256xf32>
    %58 = arith.subf %55, %57 : vector<4x8x256xf32>
    %cst_24 = arith.constant dense<0.000000e+00> : vector<4x256xf32>
    %59 = vector.multi_reduction <add>, %58, %cst_24 [1] : vector<4x8x256xf32> to vector<4x256xf32>
    %60 = arith.addf %53, %59 : vector<4x256xf32>
    %c0_25 = arith.constant 0 : index
    %c0_26 = arith.constant 0 : index
    %61 = vector.load %arg9[%c0_25, %c0_26] : memref<4x256xf32, #tpu.memory_space<vmem>>, vector<4x256xf32>
    tpu.vector_store %arg9[%c0_25, %c0_26], %60 {strides = array<i32>} : memref<4x256xf32, #tpu.memory_space<vmem>>, vector<4x256xf32>,
    %c1_i32 = arith.constant 1 : i32
    %62 = arith.cmpi eq, %arg2, %c1_i32 : i32
    %63 = arith.extui %62 : i1 to i32
    %c0_i32_27 = arith.constant 0 : i32
    %64 = arith.cmpi ne, %63, %c0_i32_27 : i32
    scf.if %64 {
      %c0_28 = arith.constant 0 : index
      %c0_29 = arith.constant 0 : index
      %65 = vector.load %arg8[%c0_28, %c0_29] : memref<4x256xf32, #tpu.memory_space<vmem>>, vector<4x256xf32>
      %cst_30 = arith.constant 6.250000e-02 : f32
      %66 = vector.broadcast %cst_30 : f32 to vector<4x256xf32>
      %67 = arith.mulf %65, %66 : vector<4x256xf32>
      %c0_31 = arith.constant 0 : index
      %c0_32 = arith.constant 0 : index
      %c0_33 = arith.constant 0 : index
      %68 = vector.load %arg6[%c0_31, %c0_32, %c0_33] : memref<1x4x256xf32, #tpu.memory_space<vmem>>, vector<1x4x256xf32>
      %69 = vector.shape_cast %68 : vector<1x4x256xf32> to vector<4x256xf32>
      %70 = vector.shape_cast %67 : vector<4x256xf32> to vector<1x4x256xf32>
      tpu.vector_store %arg6[%c0_31, %c0_32, %c0_33], %70 {strides = array<i32>} : memref<1x4x256xf32, #tpu.memory_space<vmem>>, vector<1x4x256xf32>,
      %c0_34 = arith.constant 0 : index
      %c0_35 = arith.constant 0 : index
      %71 = vector.load %arg9[%c0_34, %c0_35] : memref<4x256xf32, #tpu.memory_space<vmem>>, vector<4x256xf32>
      %cst_36 = arith.constant 6.250000e-02 : f32
      %72 = vector.broadcast %cst_36 : f32 to vector<4x256xf32>
      %73 = arith.mulf %71, %72 : vector<4x256xf32>
      %c0_37 = arith.constant 0 : index
      %c0_38 = arith.constant 0 : index
      %c0_39 = arith.constant 0 : index
      %74 = vector.load %arg7[%c0_37, %c0_38, %c0_39] : memref<1x4x256xf32, #tpu.memory_space<vmem>>, vector<1x4x256xf32>
      %75 = vector.shape_cast %74 : vector<1x4x256xf32> to vector<4x256xf32>
      %76 = vector.shape_cast %73 : vector<4x256xf32> to vector<1x4x256xf32>
      tpu.vector_store %arg7[%c0_37, %c0_38, %c0_39], %76 {strides = array<i32>} : memref<1x4x256xf32, #tpu.memory_space<vmem>>, vector<1x4x256xf32>,
    } else {
    }
    return
  }
  func.func @transform_0(%arg0: i32, %arg1: i32, %arg2: i32) -> (i32, i32, i32) {
    %c0_i32 = arith.constant 0 : i32
    %c0_i32_0 = arith.constant 0 : i32
    return %arg0, %c0_i32, %arg1 : i32, i32, i32
  }
  func.func @transform_1(%arg0: i32, %arg1: i32, %arg2: i32) -> (i32, i32, i32, i32) {
    %c0_i32 = arith.constant 0 : i32
    %c0_i32_0 = arith.constant 0 : i32
    %c0_i32_1 = arith.constant 0 : i32
    return %arg0, %c0_i32, %arg2, %c0_i32_0 : i32, i32, i32, i32
  }
  func.func @transform_2(%arg0: i32, %arg1: i32, %arg2: i32) -> (i32, i32, i32, i32) {
    %c0_i32 = arith.constant 0 : i32
    %c0_i32_0 = arith.constant 0 : i32
    %c0_i32_1 = arith.constant 0 : i32
    return %arg0, %c0_i32, %arg2, %c0_i32_0 : i32, i32, i32, i32
  }
  func.func @transform_3(%arg0: i32, %arg1: i32, %arg2: i32) -> (i32, i32, i32) {
    %c0_i32 = arith.constant 0 : i32
    %c0_i32_0 = arith.constant 0 : i32
    return %arg0, %c0_i32, %arg1 : i32, i32, i32
  }
  func.func @transform_4(%arg0: i32, %arg1: i32, %arg2: i32) -> (i32, i32, i32) {
    %c0_i32 = arith.constant 0 : i32
    %c0_i32_0 = arith.constant 0 : i32
    return %arg0, %c0_i32, %arg1 : i32, i32, i32
  }
}

</mosaic_0001>

<bundles_post_ra>
// kernel: tpu_custom_call.1
= control target key start
LH: loop header
LB: loop body
LE: loop exit
PB: predicated region body
PF: predicated region fallthrough
CT: control target
= control target key end

     0   :  { %s4027_s0 = inlined_call_operand.hbm [shape: f32[2,2,256], index: 0, kind: input, shape index: {}]   ;;  %s4028_s1 = inlined_call_operand.hbm [shape: f32[2,4,16,16], index: 1, kind: input, shape index: {}]   ;;  %s4029_s2 = inlined_call_operand.hbm [shape: f32[2,4,16,16], index: 2, kind: input, shape index: {}]   ;;  %s4030_s3 = inlined_call_operand.hbm [shape: f32[2,4,256], index: 3, kind: output, shape index: {0}]   ;;  %s4031_s4 = inlined_call_operand.hbm [shape: f32[2,4,256], index: 4, kind: output, shape index: {1}]  }
   0x1   :  { %4049 = sst [smem:[#allocation24_spill]] %s4028_s1 }
   0x2   :  { %4050 = sst [smem:[#allocation25_spill]] %s4029_s2 }
   0x3   :  { %4051 = sst [smem:[#allocation26_spill]] %s4030_s3 }
   0x4   :  { %4052 = sst [smem:[#allocation27_spill]] %s4031_s4 }
   0x5   :  { %10 = vsyncpa [#allocation5], 0 }
   0x6   :  { %12 = vsyncpa [#allocation5 + $0x1], 0 }
   0x7   :  { %13 = vsyncpa [#allocation8], 0 }
   0x8   :  { %15 = vsyncpa [#allocation8 + $0x1], 0 }
   0x9   :  { %16 = vsyncpa [#allocation6], 0 }
   0xa   :  { %18 = vsyncpa [#allocation6 + $0x1], 0 }
   0xb   :  { %19 = vsyncpa [#allocation12], 0 }
   0xc   :  { %21 = vsyncpa [#allocation12 + $0x1], 0  ;;  %s3054_s15 = smov 0   ;;  %s3056_s16 = smov 0  }
   0xd   :  { %s3058_s17 = smov 0   ;;  %s3060_s18 = smov 0  }
   0xe   :  { %s3062_s19 = smov 0   ;;  %s3064_s20 = smov 0  }
   0xf   :  { %s3066_s21 = smov 0   ;;  %s3068_s22 = smov 0  }
  0x10   :  { %s3070_s23 = smov 0   ;;  %s3072_s24 = smov 0  }
  0x11   :  { %s3074_s25 = smov 0  }
  0x12 LB: > { %4053 = sst [smem:[#allocation17_spill]] %s2979_s17  ;;  %s39_s26 = sadd.s32 1, %s3003_s23  ;;  %s3011_s25 = sphi %s3074_s25, %s27_s25   ;;  %s3007_s24 = sphi %s3072_s24, %s4098_s24   ;;  %s3003_s23 = sphi %s3070_s23, %s4097_s23   ;;  %s2999_s22 = sphi %s3068_s22, %s4096_s22   ;;  %s2995_s21 = sphi %s3066_s21, %s4095_s21   ;;  %s2991_s20 = sphi %s3064_s20, %s4103_s20   ;;  %s2987_s19 = sphi %s3062_s19, %s4102_s19   ;;  %s2983_s18 = sphi %s3060_s18, %s4101_s18   ;;  %s2979_s17 = sphi %s3058_s17, %s4093_s17   ;;  %s2975_s16 = sphi %s3056_s16, %s4100_s16   ;;  %s2971_s15 = sphi %s3054_s15, %s4099_s15  }
  0x13   : > { %4054 = sst [smem:[#allocation18_spill]] %s3003_s23  ;;  %p4034_p0 = scmp.eq.s32.totalorder %s3011_s25, 0 }
  0x14   : > { %4055 = sst [smem:[#allocation19_spill]] %s3007_s24  ;;  %p3111_p1 = scmp.ge.s32.totalorder %s39_s26, 2 }
  0x15   : > { %p90_p2 = scmp.ne.s32.totalorder %s2979_s17, %s2975_s16  ;;  %p4033_p4 = scmp.lt.s32.totalorder %s3011_s25, 4 }
  0x16   : > { %s4105_s26 = smov (%p3111_p1, %s39_s26), 0  ;;  %s225_s29 = sand.u32 1, %s3011_s25  }
  0x17   : > { %4057 = sst [smem:[#allocation20_spill]] %s4105_s26  ;;  %p92_p3 = por %p90_p2, %p4034_p0 }
  0x18   : > { %s227_s30 = sand.u32 1, %s2979_s17   ;;  %s2471_s6 = sshll.u32 %s3007_s24, 3 }
  0x19   : > { %s3127_s5 = sshll.u32 %s227_s30, 5  ;;  %s3131_s7 = sadd.s32 %s3003_s23, %s2471_s6 }
  0x1a   : > { %s4032_s8 = sshll.u32 %s3131_s7, 7  ;;  %s229_s9 = scalar_lea.vmem [#allocation7], %s3127_s5 }
  0x1b   : > { %s237_s10 = sshll.u32 %s229_s9, 4  ;;  %s4058_s1 = sld [smem:[#allocation24_spill]]  ;;  %s3142_s10 = int_to_ptr.vmem [resolvable:$true] %s237_s10 }
  0x1c   : > { %p3146_p5 = pnand %p4033_p4, %p92_p3  ;;  %s3150_s30 = scalar_lea.sflag [#allocation8], %s225_s29 }
  0x1e   : > { %p2765_p7 = pneg %p3146_p5 }
  0x21   : > { %s3140_s13 = scalar_lea.hbm %s4058_s1, %s4032_s8  ;;  %s2768_s12 = scalar_lea.hbm %s4058_s1, 2048 }
  0x22   : > { %s2763_s6 = scalar_lea.hbm %s3140_s13, 512  ;;  %p2769_p10 = scmp.lt.u32.totalorder %s3140_s13, %s4058_s1 }
  0x23   : > { %p2764_p6 = scmp.ne.s32.totalorder %s3140_s13, %s2763_s6  ;;  %p2770_p11 = scmp.lt.u32.totalorder %s2768_s12, %s2763_s6 }
  0x24   : > { %p2772_p13 = scmp.lt.u32.totalorder %s2763_s6, %s3140_s13 }
  0x25   : > { %p2766_p8 = pnand %p2765_p7, %p2764_p6  ;;  %p2771_p12 = por %p2770_p11, %p2769_p10 }
  0x27   : > { %p2767_p9 = pneg %p2766_p8  ;;  %p2773_p2 = por %p2772_p13, %p2771_p12 }
  0x29   : > { %p2774_p3 = pnand %p2773_p2, %p2767_p9 }
  0x2b   : > { %2777 = shalt.err (!%p2774_p3)
}
  0x2c   : > { %s2778_s29 = scalar_lea.vmem %s3142_s10, 512  ;;  %s3013_s9 = smov [#allocation7]  }
  0x2d   : > { %p2779_p6 = scmp.ne.s32.totalorder %s3142_s10, %s2778_s29  ;;  %s2783_s11 = sshll.u32 %s3013_s9, 4  ;;  %s2784_s11 = int_to_ptr.vmem [resolvable:$false] %s2783_s11 }
  0x2e   : > { %s2785_s28 = scalar_lea.vmem %s2784_s11, 1024  ;;  %p2786_p0 = scmp.lt.s32.totalorder %s3142_s10, %s2784_s11 }
  0x2f   : > { %p2781_p8 = pnand %p2779_p6, %p2765_p7  ;;  %p2787_p10 = scmp.lt.s32.totalorder %s2785_s28, %s2778_s29 }
  0x31   : > { %p2782_p4 = pneg %p2781_p8  ;;  %p2788_p11 = por %p2787_p10, %p2786_p0 }
  0x33   : > { %p2789_p12 = pnand %p2788_p11, %p2782_p4 }
  0x35   : > { %2792 = shalt.err (!%p2789_p12)
}
  0x36   : > { %s4037_s8 = smov 256   ;;  %s4038_s6 = smov 128  }
  0x37   : > { %s4039_s12 = smov 8   ;;  %s79_s29 = ssub.s32 %s3003_s23, %s4105_s26 }
  0x38   : > { %2627 = dma.hbm_to_vmem [thread:$0]  (!%p3146_p5), %s3140_s13, 512, %s3142_s10, %s3150_s30, %s4037_s8, %s4038_s6, %s4039_s12  }
  0x39   : > { %s4060_s9 = sshll.u32 %s3131_s7, 7  ;;  %s4061_s2 = sld [smem:[#allocation25_spill]] }
  0x3a   : > { %s251_s4 = scalar_lea.vmem [#allocation9], %s3127_s5  ;;  %p2476_p0 = scmp.ge.s32.totalorder %s3011_s25, 1 }
  0x3b   : > { %s259_s3 = sshll.u32 %s251_s4, 4  ;;  %p267_p4 = scmp.lt.s32.totalorder %s3011_s25, 5  ;;  %s3197_s3 = int_to_ptr.vmem [resolvable:$true] %s259_s3 }
  0x3c   : > { %s3200_s7 = sadd.s32 4294967295, %s3011_s25   ;;  %s2464_s13 = sadd.s32 4294967294, %s3011_s25  }
  0x3d   : > { %p3193_p9 = pnand %p2476_p0, %p267_p4  ;;  %s55_s4 = sadd.s32 1, %s2991_s20 }
  0x3e   : > { %p68_p13 = scmp.ne.s32.totalorder %s2987_s19, %s2983_s18  ;;  %p69_p3 = scmp.eq.s32.totalorder %s3200_s7, 0 }
  0x3f   : > { %s3188_s1 = scalar_lea.hbm %s4061_s2, %s4060_s9  ;;  %s46_s9 = sadd.s32 1, %s3007_s24 }
  0x40   : > { %s4062_s10 = scalar_select %p3193_p9, 1, 0 }
  0x41   : > { %s4107_s9 = smov (!%p3111_p1, %s46_s9), %s3007_s24  ;;  %p62_p6 = scmp.ne.s32.totalorder %s2991_s20, %s2987_s19 }
  0x42   : > { %p48_p2 = scmp.ge.s32.totalorder %s4107_s9, 2  ;;  %p96_p8 = scmp.ne.s32.totalorder %s2975_s16, %s2971_s15 }
  0x43   : > { %p3220_p1 = por %p69_p3, %p68_p13  ;;  %p150_p11 = scmp.eq.s32.totalorder %s3200_s7, 3 }
  0x44   : > { %s4109_s9 = smov (%p48_p2, %s4107_s9), 0  ;;  %p3224_p10 = por %p96_p8, %p69_p3 }
  0x45   : > { %4063 = sst [smem:[#allocation21_spill]] %s4109_s9  ;;  %s50_s11 = ssub.s32 %s3007_s24, %s4109_s9 }
  0x46   : > { %s4064_s27 = scalar_select %p3220_p1, 1, 0 }
  0x47   : > { %s4065_s5 = scalar_select %p3224_p10, 1, 0 }
  0x48   : > { %p53_p12 = scmp.eq.s32.totalorder %s50_s11, 0  ;;  %s80_s15 = sor.u32 %s79_s29, %s50_s11 }
  0x49   : > { %p81_p0 = scmp.eq.s32.totalorder %s80_s15, 0  ;;  %p3234_p4 = por %p150_p11, %p62_p6 }
  0x4a   : > { %s3239_s8 = scalar_select %p53_p12, %s2991_s20, %s55_s4  }
  0x4b   : > { %s4066_s28 = scalar_select %p3234_p4, 1, 0 }
  0x4c   : > { %4067 = sst [smem:[#allocation22_spill]] %s3239_s8  ;;  %s4068_s6 = sadd.s32 1, %s2979_s17 }
  0x4d   : > { %s3244_s12 = scalar_select %p81_p0, %s2979_s17, %s4068_s6  }
  0x4e   : > { %p156_p2 = scmp.eq.s32.totalorder %s2464_s13, 3  ;;  %s4043_s9 = sand.u32 1, %s2991_s20  }
  0x4f   : > { %4069 = sst [smem:[#allocation23_spill]] %s3244_s12  ;;  %p4070_p3 = scmp.eq.s32.totalorder %s3011_s25, 0 }
  0x50   : > { %s2467_s29 = sshll.u32 %s4043_s9, 2  ;;  %p3257_p11 = por %p156_p2, %p68_p13 }
  0x51   : > { %p64_p8 = por %p4070_p3, %p62_p6  ;;  %s2560_s15 = sshll.u32 %s3007_s24, 6 }
  0x52   : > { %s4071_s11 = scalar_select %p3257_p11, 1, 0 }
  0x53   : > { %s208_s4 = scalar_lea.vmem [#allocation4], %s2467_s29  ;;  %s3265_s13 = scalar_lea.hbm %s4027_s0, %s2560_s15 }
  0x54   : > { %s218_s26 = sshll.u32 %s208_s4, 4  ;;  %p4072_p12 = scmp.lt.s32.totalorder %s3011_s25, 4  ;;  %s3267_s26 = int_to_ptr.vmem [resolvable:$true] %s218_s26 }
  0x55   : > { %s2793_s9 = scalar_lea.hbm %s3188_s1, 512  ;;  %s2798_s24 = scalar_lea.hbm %s4061_s2, 2048 }
  0x56   : > { %p3271_p6 = pnand %p4072_p12, %p64_p8  ;;  %p2794_p13 = scmp.ne.s32.totalorder %s3188_s1, %s2793_s9 }
  0x57   : > { %p2799_p3 = scmp.lt.u32.totalorder %s3188_s1, %s4061_s2  ;;  %p2800_p11 = scmp.lt.u32.totalorder %s2798_s24, %s2793_s9 }
  0x58   : > { %p2796_p0 = pnand %p2794_p13, %p2765_p7  ;;  %p2802_p8 = scmp.lt.u32.totalorder %s2793_s9, %s3188_s1 }
  0x59   : > { %p2801_p4 = por %p2800_p11, %p2799_p3 }
  0x5a   : > { %p2797_p2 = pneg %p2796_p0 }
  0x5b   : > { %p2803_p12 = por %p2802_p8, %p2801_p4 }
  0x5d   : > { %p2804_p10 = pnand %p2803_p12, %p2797_p2 }
  0x5f   : > { %2807 = shalt.err (!%p2804_p10)
}
  0x60   : > { %s2808_s6 = scalar_lea.vmem %s3197_s3, 512  ;;  %s3017_s29 = smov [#allocation9]  }
  0x61   : > { %p2809_p13 = scmp.ne.s32.totalorder %s3197_s3, %s2808_s6  ;;  %s2813_s4 = sshll.u32 %s3017_s29, 4  ;;  %s2814_s4 = int_to_ptr.vmem [resolvable:$false] %s2813_s4 }
  0x62   : > { %s2815_s23 = scalar_lea.vmem %s2814_s4, 1024  ;;  %p2816_p9 = scmp.lt.s32.totalorder %s3197_s3, %s2814_s4 }
  0x63   : > { %p2811_p0 = pnand %p2809_p13, %p2765_p7  ;;  %p2817_p11 = scmp.lt.s32.totalorder %s2815_s23, %s2808_s6 }
  0x65   : > { %p2812_p1 = pneg %p2811_p0  ;;  %p2818_p3 = por %p2817_p11, %p2816_p9 }
  0x67   : > { %p2819_p4 = pnand %p2818_p3, %p2812_p1 }
  0x69   : > { %2822 = shalt.err (!%p2819_p4)
}
  0x6a   : > { %s4074_s24 = smov 8   ;;  %s4075_s9 = smov 128  }
  0x6b   : > { %s4076_s15 = smov 256   ;;  %s4077_s6 = sand.u32 1, %s2991_s20  }
  0x6c   : > { %2630 = dma.hbm_to_vmem [thread:$0]  (!%p3146_p5), %s3188_s1, 512, %s3197_s3, %s3150_s30, %s4076_s15, %s4075_s9, %s4074_s24  }
  0x6d   : > { %s205_s29 = scalar_lea.sflag [#allocation5], %s4077_s6  ;;  %s2823_s4 = scalar_lea.hbm %s3265_s13, 64 }
  0x6e   : > { %p2824_p7 = scmp.ne.s32.totalorder %s3265_s13, %s2823_s4  ;;  %p2825_p9 = pneg %p3271_p6 }
  0x6f   : > { %s2828_s2 = scalar_lea.hbm %s4027_s0, 128  ;;  %p2829_p2 = scmp.lt.u32.totalorder %s3265_s13, %s4027_s0 }
  0x70   : > { %p2826_p1 = pnand %p2825_p9, %p2824_p7  ;;  %p2830_p8 = scmp.lt.u32.totalorder %s2828_s2, %s2823_s4 }
  0x71   : > { %p2832_p12 = scmp.lt.u32.totalorder %s2823_s4, %s3265_s13 }
  0x72   : > { %p2827_p10 = pneg %p2826_p1  ;;  %p2831_p5 = por %p2830_p8, %p2829_p2 }
  0x74   : > { %p2833_p13 = por %p2832_p12, %p2831_p5 }
  0x76   : > { %p2834_p0 = pnand %p2833_p13, %p2827_p10 }
  0x78   : > { %2837 = shalt.err (!%p2834_p0)
}
  0x79   : > { %s2838_s1 = scalar_lea.vmem %s3267_s26, 64  ;;  %s3018_s3 = smov [#allocation4]  }
  0x7a   : > { %p2839_p11 = scmp.ne.s32.totalorder %s3267_s26, %s2838_s1  ;;  %s2843_s30 = sshll.u32 %s3018_s3, 4  ;;  %s2844_s30 = int_to_ptr.vmem [resolvable:$false] %s2843_s30 }
  0x7b   : > { %s2845_s17 = scalar_lea.vmem %s2844_s30, 128  ;;  %p2846_p7 = scmp.lt.s32.totalorder %s3267_s26, %s2844_s30 }
  0x7c   : > { %p2841_p3 = pnand %p2839_p11, %p2825_p9  ;;  %p2847_p1 = scmp.lt.s32.totalorder %s2845_s17, %s2838_s1 }
  0x7e   : > { %p2842_p4 = pneg %p2841_p3  ;;  %p2848_p2 = por %p2847_p1, %p2846_p7 }
  0x80   : > { %p2849_p8 = pnand %p2848_p2, %p2842_p4 }
  0x82   : > { %2852 = shalt.err (!%p2849_p8)
}
  0x83   : > { %2624 = dma.hbm_to_vmem [thread:$0]  (!%p3271_p6), %s3265_s13, 64, %s3267_s26, %s205_s29  }
  0x84   : > { %p4078_p10 = scmp.ne.s32.totalorder %s4062_s10, 0 }
  0x85   : > { %s3332_s2 = sand.u32 (!%p4078_p10), 1, %s2987_s19   ;;  %p4079_p9 = scmp.ne.s32.totalorder (!%p4078_p10), %s4064_s27, 0 }
  0x86   : > { %271 = sbr.rel (%p4078_p10) target bundleno = 669 (0x29d), region = 32  ;;  %s2477_s12 = sshll.u32 (!%p4078_p10), %s3332_s2, 2 }
  0x87   : > { %s274_s24 = scalar_lea.sflag (!%p4078_p10), [#allocation5], %s3332_s2  ;;  %s277_s9 = scalar_lea.vmem (!%p4078_p10), [#allocation4], %s2477_s12 }
  0x8d   : > { %2954 = dma.done.wait (%p4079_p9), %s274_s24, 64  }
  0x8e   : > { %2956 = vsyncadd (%p4079_p9), %s274_s24, 4294967232  ;;  %s282_s26 = sand.u32 1, %s3200_s7   ;;  %s284_s8 = sand.u32 1, %s2975_s16  }
  0x8f   : > { %s2478_s10 = sshll.u32 %s284_s8, 5  ;;  %s283_s13 = scalar_lea.sflag [#allocation8], %s282_s26 }
  0x90   : > { %s3342_s15 = scalar_lea.vmem [#allocation7], %s2478_s10  ;;  %p4080_p6 = scmp.ne.s32.totalorder %s4065_s5, 0 }
  0x92   : > { %2958 = dma.done.wait (%p4080_p6), %s283_s13, 1024  }
  0x93   : > { %2960 = vsyncadd (%p4080_p6), %s283_s13, 4294966272  ;;  %s2480_s6 = sshll.u32 %s3332_s2, 3  ;;  %s3349_s29 = scalar_lea.vmem [#allocation9], %s2478_s10 }
  0x94   : > { %s3351_s27 = scalar_lea.vmem [#allocation10], %s2480_s6  ;;  %s3353_s4 = scalar_lea.vmem [#allocation11], %s2480_s6 }
  0x95   : > { %p2482_p5 = scmp.ne.s32.totalorder %s2995_s21, 0 }
  0x96   : > { %v3019_v0 = vmov (!%p2482_p5), 0.0  }
  0x97   : > { %341 = sbr.rel (%p2482_p5) target bundleno = 158 (0x9e), region = 48  ;;  %342 = vst [vmem:[#allocation2] sm:$0xff] (!%p2482_p5), %v3019_v0  ;;  %343 = vst [vmem:[#allocation3] sm:$0xff] (!%p2482_p5), %v3019_v0 }
  0x9e PF: > { %v345_v1 = vlaneseq  ;;  %s2533_s7 = sshll.u32 %s2995_s21, 3  ;;  %v344_v3 = vld [vmem:[%s277_s9] sm:$0xf]  ;;  %v3020_v52 = vmov 683565275   ;;  %p2551_p12 = scmp.ne.s32.totalorder %s2995_s21, 1 }
  0x9f   : > { %s2534_s5 = sadd.s32 4294967288, %s2533_s7  ;;  %v3021_v54 = vmov 2475754826   ;;  %v3022_v56 = vmov 2131351028  }
  0xa0   : > { %v346_v2 = vshrl.u32 %v345_v1, 7  ;;  %s1606_s14 = scvt.s32.f32 %s2534_s5  ;;  %v3023_v58 = vmov 2102212464   ;;  %v3024_v60 = vmov 920167782  }
  0xa2   : > { %v347_v4 = vadd.s32 8, %v346_v2  ;;  %v348_v5 = vcvt.s32.f32 %v346_v2  ;;  %v355_v6 = vsub.s32 1, %v346_v2  ;;  %v359_v7 = vsub.s32 3, %v346_v2 }
  0xa3   : > { %v1611_v8 = vsub.s32 0, %v346_v2  ;;  %v1615_v9 = vsub.s32 2, %v346_v2  ;;  %v1607_v13 = vstv %s1606_s14 }
  0xa4   : > { %v349_v10 = vcvt.s32.f32 %v347_v4  ;;  %v2483_v11 = vadd.f32 -8.0, %v348_v5  ;;  %v360_v12 = vrot.slane %v344_v3, %v359_v7  ;;  %v1608_v14 = vadd.f32 %v1607_v13, %v348_v5 }
  0xa5   : > { %v1612_v15 = vrot.slane %v344_v3, %v1611_v8  ;;  %v1616_v16 = vrot.slane %v344_v3, %v1615_v9  ;;  %v356_v17 = vrot.slane %v344_v3, %v355_v6  ;;  %v3025_v4 = vmov 1326507024  }
  0xa6   : > { %v3357_v18 = vadd.f32 -8.0, %v349_v10  ;;  %v370_v19 = vrot.slane %v360_v12, %v355_v6 }
  0xa7   : > { %v1622_v20 = vrot.slane %v1612_v15, %v1611_v8  ;;  %v1626_v21 = vrot.slane %v1616_v16, %v1611_v8  ;;  %v3368_v26 = vrot.slane %v356_v17, %v355_v6 }
  0xa8   : > { %v3359_v22 = vmul.f32 %v2483_v11, %v370_v19  ;;  %v3362_v23 = vmul.f32 %v3357_v18, %v370_v19 }
  0xa9   : > { %v3364_v24 = vmul.f32 %v1622_v20, %v1608_v14  ;;  %v3366_v25 = vmul.f32 %v1626_v21, %v1608_v14  ;;  %v3379_v35 = vmul.f32 %v2483_v11, %v3368_v26 }
  0xaa   : > { %v478_v27 = vand.u32 2147483647, %v3359_v22  ;;  %v481_v28 = vand.u32 2139095040, %v3359_v22  ;;  %v684_v29 = vand.u32 2147483647, %v3362_v23  ;;  %v687_v30 = vand.u32 2139095040, %v3362_v23 }
  0xab   : > { %v378_v42 = vand.u32 2139095040, %v3379_v35  ;;  %vm480_vm13 = vcmp.lt.s32.totalorder %v3359_v22, 0 }
  0xac   : > { %v482_v31 = vshrl.u32 %v481_v28, 23  ;;  %v485_v32 = vand.u32 8388607, %v478_v27  ;;  %v688_v33 = vshrl.u32 %v687_v30, 23  ;;  %v691_v34 = vand.u32 8388607, %v684_v29 }
  0xad   : > { %v3386_v50 = vshrl.u32 %v378_v42, 23  ;;  %vm3469_vm14 = vcmp.le.f32.partialorder %v478_v27, 0.7853982 }
  0xae   : > { %v2489_v36 = vadd.s32 4294967169, %v482_v31  ;;  %v2497_v37 = vadd.s32 4294967169, %v688_v33  ;;  %v486_v39 = vor.u32 8388608, %v485_v32  ;;  %v692_v40 = vor.u32 8388608, %v691_v34 }
  0xb0   : > { %v488_v38 = vadd.s32 1, %v2489_v36  ;;  %v694_v41 = vadd.s32 1, %v2497_v37  ;;  %v3382_v47 = vshll.u32 %v486_v39, 8  ;;  %v3384_v49 = vshll.u32 %v692_v40, 8 }
  0xb2   : > { %vm489_vm0 = vcmp.gt.s32.totalorder %v488_v38, 0  ;;  %vm695_vm1 = vcmp.gt.s32.totalorder %v694_v41, 0 }
  0xb3   : > { %v490_v43 = vsel %vm489_vm0, %v488_v38, 0  ;;  %v696_v46 = vsel %vm695_vm1, %v694_v41, 0 }
  0xb4   : > { %v491_v44 = vshrl.u32 %v490_v43, 5  ;;  %v492_v45 = vand.u32 31, %v490_v43  ;;  %v698_v48 = vand.u32 31, %v696_v46  ;;  %v3393_v62 = vshrl.u32 %v696_v46, 5 }
  0xb6   : > { %v493_v51 = vsub.s32 32, %v492_v45  ;;  %v495_v53 = vshll.u32 %v3020_v52, %v492_v45  ;;  %v498_v55 = vshll.u32 %v3021_v54, %v492_v45  ;;  %v501_v57 = vshll.u32 %v3022_v56, %v492_v45 }
  0xb7   : > { %v504_v59 = vshll.u32 %v3023_v58, %v492_v45  ;;  %v507_v61 = vshll.u32 %v3024_v60, %v492_v45  ;;  %vm510_vm2 = vcmp.lt.s32.totalorder %v491_v44, 1  ;;  %vm511_vm3 = vcmp.lt.s32.totalorder %v491_v44, 2 }
  0xb8   : > { %v494_v63 = vshrl.u32 %v3020_v52, %v493_v51  ;;  %v496_v0 = vshrl.u32 %v3021_v54, %v493_v51  ;;  %v499_v1 = vshrl.u32 %v3022_v56, %v493_v51  ;;  %v502_v2 = vshrl.u32 %v3023_v58, %v493_v51 }
  0xb9   : > { %v505_v3 = vshrl.u32 %v3024_v60, %v493_v51  ;;  %v508_v5 = vshrl.u32 %v3025_v4, %v493_v51  ;;  %vm513_vm4 = vcmp.lt.s32.totalorder %v491_v44, 4  ;;  %v699_v9 = vsub.s32 32, %v698_v48 }
  0xba   : > { %v497_v6 = vor.u32 %v496_v0, %v495_v53  ;;  %v500_v7 = vor.u32 %v499_v1, %v498_v55  ;;  %v503_v8 = vor.u32 %v502_v2, %v501_v57  ;;  %vm512_vm5 = vcmp.lt.s32.totalorder %v491_v44, 3 }
  0xbb   : > { %v506_v10 = vor.u32 %v505_v3, %v504_v59  ;;  %v509_v11 = vor.u32 %v508_v5, %v507_v61  ;;  %v701_v12 = vshll.u32 %v3020_v52, %v698_v48  ;;  %v704_v21 = vshll.u32 %v3021_v54, %v698_v48 }
  0xbc   : > { %v514_v13 = vsel %vm510_vm2, %v494_v63, %v497_v6  ;;  %v515_v14 = vsel %vm513_vm4, %v503_v8, 2102212464  ;;  %v518_v15 = vsel %vm510_vm2, %v497_v6, %v500_v7  ;;  %v522_v16 = vsel %vm510_vm2, %v500_v7, %v503_v8 }
  0xbd   : > { %v516_v17 = vsel %vm512_vm5, %v500_v7, %v515_v14  ;;  %v519_v19 = vsel %vm513_vm4, %v506_v10, 920167782  ;;  %v523_v20 = vsel %vm513_vm4, %v509_v11, 1326507024  ;;  %v700_v31 = vshrl.u32 %v3020_v52, %v699_v9 }
  0xbe   : > { %v520_v28 = vsel %vm512_vm5, %v503_v8, %v519_v19  ;;  %v524_v30 = vsel %vm512_vm5, %v506_v10, %v523_v20  ;;  %v702_v32 = vshrl.u32 %v3021_v54, %v699_v9  ;;  %v517_v33 = vsel %vm511_vm3, %v514_v13, %v516_v17 }
  0xbf   : > { %v521_v34 = vsel %vm511_vm3, %v518_v15, %v520_v28  ;;  %v525_v36 = vsel %vm511_vm3, %v522_v16, %v524_v30  ;;  %v705_v37 = vshrl.u32 %v3022_v56, %v699_v9  ;;  %v707_v45 = vshll.u32 %v3022_v56, %v698_v48 }
  0xc0   : > { %v3413_v38 = vmul.u32.u64.low %v3382_v47, %v525_v36  ;;  %v3414_v39 = vmul.u32.u64.high %v3382_v47, %v525_v36, %v3413_v38  ;;  %v3417_v40 = vmul.u32.u64.low %v3382_v47, %v521_v34  ;;  %v3418_v41 = vmul.u32.u64.high %v3382_v47, %v521_v34, %v3417_v40 }
  0xc1   : > { %v703_v42 = vor.u32 %v702_v32, %v701_v12  ;;  %v706_v43 = vor.u32 %v705_v37, %v704_v21  ;;  %v708_v46 = vshrl.u32 %v3023_v58, %v699_v9  ;;  %v710_v44 = vshll.u32 %v3023_v58, %v698_v48 }
  0xc2   : > { %v711_v51 = vshrl.u32 %v3024_v60, %v699_v9  ;;  %v713_v53 = vshll.u32 %v3024_v60, %v698_v48  ;;  %v714_v55 = vshrl.u32 %v3025_v4, %v699_v9  ;;  %v533_v57 = vmul.u32 %v3382_v47, %v517_v33 }
  0xc3   : > { %v709_v59 = vor.u32 %v708_v46, %v707_v45  ;;  %vm716_vm6 = vcmp.lt.s32.totalorder %v3393_v62, 1  ;;  %vm717_vm7 = vcmp.lt.s32.totalorder %v3393_v62, 2  ;;  %vm535_vm8 = vc.u32 %v3414_v39, %v3417_v40 }
  0xc4   : > { %v536_v61 = vadd.s32 1, %v3418_v41  ;;  %v712_v63 = vor.u32 %v711_v51, %v710_v44  ;;  %vm718_vm9 = vcmp.lt.s32.totalorder %v3393_v62, 3  ;;  %v715_v0 = vor.u32 %v714_v55, %v713_v53 }
  0xc5   : > { %vm719_vm10 = vcmp.lt.s32.totalorder %v3393_v62, 4  ;;  %v720_v48 = vsel %vm716_vm6, %v700_v31, %v703_v42  ;;  %v724_v1 = vsel %vm716_vm6, %v703_v42, %v706_v43  ;;  %v728_v5 = vsel %vm716_vm6, %v706_v43, %v709_v59 }
  0xc6   : > { %v537_v47 = vsel %vm535_vm8, %v536_v61, %v3418_v41  ;;  %v721_v2 = vsel %vm719_vm10, %v709_v59, 2102212464  ;;  %v725_v3 = vsel %vm719_vm10, %v712_v63, 920167782  ;;  %v729_v9 = vsel %vm719_vm10, %v715_v0, 1326507024 }
  0xc7   : > { %v538_v6 = vadd.s32 %v537_v47, %v533_v57  ;;  %v722_v7 = vsel %vm718_vm9, %v706_v43, %v721_v2  ;;  %v726_v8 = vsel %vm718_vm9, %v709_v59, %v725_v3  ;;  %v730_v12 = vsel %vm718_vm9, %v712_v63, %v729_v9 }
  0xc8   : > { %v723_v10 = vsel %vm717_vm7, %v720_v48, %v722_v7  ;;  %v727_v11 = vsel %vm717_vm7, %v724_v1, %v726_v8  ;;  %v731_v14 = vsel %vm717_vm7, %v728_v5, %v730_v12  ;;  %v2485_v21 = vadd.s32 4294967169, %v3386_v50 }
  0xc9   : > { %v539_v13 = vadd.s32 536870912, %v538_v6  ;;  %v3443_v15 = vmul.u32.u64.low %v3384_v49, %v727_v11  ;;  %v3444_v16 = vmul.u32.u64.high %v3384_v49, %v727_v11, %v3443_v15  ;;  %v739_v28 = vmul.u32 %v3384_v49, %v723_v10 }
  0xca   : > { %v3447_v17 = vmul.u32.u64.low %v3384_v49, %v731_v14  ;;  %v3448_v19 = vmul.u32.u64.high %v3384_v49, %v731_v14, %v3447_v17  ;;  %v375_v30 = vand.u32 2147483647, %v3379_v35  ;;  %v385_v62 = vadd.s32 1, %v2485_v21 }
  0xcb   : > { %v540_v20 = vshrl.u32 %v539_v13, 30  ;;  %v742_v32 = vadd.s32 1, %v3444_v16  ;;  %v3463_v46 = vmul.f32 %v3357_v18, %v3368_v26  ;;  %v534_v61 = vadd.s32 %v3417_v40, %v3414_v39 }
  0xcc   : > { %vm741_vm11 = vc.u32 %v3448_v19, %v3443_v15  ;;  %vm386_vm12 = vcmp.gt.s32.totalorder %v385_v62, 0  ;;  %v382_v37 = vand.u32 8388607, %v375_v30  ;;  %v740_v18 = vadd.s32 %v3443_v15, %v3448_v19 }
  0xcd   : > { %v541_v31 = vshll.u32 %v540_v20, 30  ;;  %v743_v34 = vsel %vm741_vm11, %v742_v32, %v3444_v16  ;;  %v387_v38 = vsel %vm386_vm12, %v385_v62, 0  ;;  %v564_v41 = vsub.s32 4, %v540_v20 }
  0xce   : > { %v744_v36 = vadd.s32 %v743_v34, %v739_v28  ;;  %v389_v42 = vand.u32 31, %v387_v38  ;;  %v383_v44 = vor.u32 8388608, %v382_v37  ;;  %v581_v26 = vand.u32 2147483647, %v3463_v46 }
  0xcf   : > { %v542_v33 = vsub.s32 %v538_v6, %v541_v31  ;;  %v565_v53 = vsel %vm480_vm13, %v564_v41, %v540_v20  ;;  %v584_v1 = vand.u32 2139095040, %v3463_v46  ;;  %v388_v12 = vshrl.u32 %v387_v38, 5 }
  0xd0   : > { %v745_v49 = vadd.s32 536870912, %v744_v36  ;;  %v390_v55 = vsub.s32 32, %v389_v42  ;;  %v3480_v0 = vsel %vm3469_vm14, 0, %v565_v53  ;;  %v3484_v27 = vshll.u32 %v383_v44, 8 }
  0xd1   : > { %v544_v50 = vsub.s32 0, %v542_v33  ;;  %v392_v47 = vshll.u32 %v3020_v52, %v389_v42  ;;  %v395_v40 = vshll.u32 %v3021_v54, %v389_v42  ;;  %v398_v6 = vshll.u32 %v3022_v56, %v389_v42 }
  0xd2   : > { %v3459_v45 = vshrl.u32 %v745_v49, 30  ;;  %v393_v39 = vshrl.u32 %v3021_v54, %v390_v55  ;;  %v396_v5 = vshrl.u32 %v3022_v56, %v390_v55  ;;  %v399_v10 = vshrl.u32 %v3023_v58, %v390_v55 }
  0xd3   : > { %v2490_v43 = vmin.u32 %v544_v50, %v542_v33  ;;  %v401_v13 = vshll.u32 %v3023_v58, %v389_v42  ;;  %v402_v14 = vshrl.u32 %v3024_v60, %v390_v55  ;;  %v391_v17 = vshrl.u32 %v3020_v52, %v390_v55 }
  0xd4   : > { %v747_v59 = vshll.u32 %v3459_v45, 30  ;;  %v394_v19 = vor.u32 %v393_v39, %v392_v47  ;;  %v397_v21 = vor.u32 %v396_v5, %v395_v40  ;;  %v404_v28 = vshll.u32 %v3024_v60, %v389_v42 }
  0xd5   : > { %v546_v51 = vclz %v2490_v43  ;;  %v405_v31 = vshrl.u32 %v3025_v4, %v390_v55  ;;  %v585_v34 = vshrl.u32 %v584_v1, 23  ;;  %v403_v37 = vor.u32 %v402_v14, %v401_v13 }
  0xd6   : > { %v3482_v48 = vsub.s32 %v744_v36, %v747_v59  ;;  %vm407_vm0 = vcmp.lt.s32.totalorder %v388_v12, 1  ;;  %vm408_vm1 = vcmp.lt.s32.totalorder %v388_v12, 2  ;;  %vm409_vm2 = vcmp.lt.s32.totalorder %v388_v12, 3 }
  0xd7   : > { %v2491_v63 = vadd.s32 4294967294, %v546_v51  ;;  %v406_v38 = vor.u32 %v405_v31, %v404_v28  ;;  %vm686_vm3 = vcmp.lt.s32.totalorder %v3362_v23, 0  ;;  %vm410_vm5 = vcmp.lt.s32.totalorder %v388_v12, 4 }
  0xd8   : > { %v750_v3 = vsub.s32 0, %v3482_v48  ;;  %v411_v49 = vsel %vm407_vm0, %v391_v17, %v394_v19  ;;  %v415_v42 = vsel %vm407_vm0, %v394_v19, %v397_v21  ;;  %v770_v47 = vsub.s32 4, %v3459_v45 }
  0xd9   : > { %vm2492_vm15 = vcmp.lt.s32.totalorder %v2491_v63, 0  ;;  %v416_v39 = vsel %vm410_vm5, %v403_v37, 920167782  ;;  %v420_v40 = vsel %vm410_vm5, %v406_v38, 1326507024  ;;  %v2493_v17 = vadd.s32 4294967169, %v585_v34 }
  0xda   : > { %v549_v2 = vsel %vm2492_vm15, 0, %v2491_v63  ;;  %v2498_v11 = vmin.u32 %v750_v3, %v3482_v48  ;;  %v771_v28 = vsel %vm686_vm3, %v770_v47, %v3459_v45  ;;  %v3533_v57 = vand.u32 3, %v3480_v0 }
  0xdb   : > { %v550_v7 = vsub.s32 32, %v549_v2  ;;  %v551_v8 = vshll.u32 %v542_v33, %v549_v2  ;;  %v554_v9 = vsub.s32 4294967266, %v549_v2  ;;  %v400_v33 = vor.u32 %v399_v10, %v398_v6 }
  0xdc   : > { %v752_v20 = vclz %v2498_v11  ;;  %v421_v6 = vsel %vm409_vm2, %v403_v37, %v420_v40  ;;  %v591_v31 = vadd.s32 1, %v2493_v17  ;;  %vm3537_vm7 = vcmp.le.f32.partialorder %v684_v29, 0.7853982 }
  0xdd   : > { %v552_v15 = vshrl.u32 %v534_v61, %v550_v7  ;;  %v555_v16 = vadd.s32 127, %v554_v9  ;;  %v412_v51 = vsel %vm410_vm5, %v400_v33, 2102212464  ;;  %v419_v53 = vsel %vm407_vm0, %v397_v21, %v400_v33 }
  0xde   : > { %v2499_v36 = vadd.s32 4294967294, %v752_v20  ;;  %v413_v63 = vsel %vm409_vm2, %v397_v21, %v412_v51  ;;  %v417_v5 = vsel %vm409_vm2, %v400_v33, %v416_v39  ;;  %v984_v21 = vadd.s32 3, %v3480_v0 }
  0xdf   : > { %v553_v32 = vor.u32 %v552_v15, %v551_v8  ;;  %v556_v62 = vshll.u32 %v555_v16, 23  ;;  %v414_v8 = vsel %vm408_vm1, %v411_v49, %v413_v63  ;;  %v418_v9 = vsel %vm408_vm1, %v415_v42, %v417_v5 }
  0xe0   : > { %vm2500_vm4 = vcmp.lt.s32.totalorder %v2499_v36, 0  ;;  %v3516_v15 = vmul.u32.u64.low %v3484_v27, %v418_v9  ;;  %v3517_v16 = vmul.u32.u64.high %v3484_v27, %v418_v9, %v3516_v15  ;;  %v3026_v33 = vmov 0.0  }
  0xe1   : > { %v557_v50 = vor.u32 4788187, %v556_v62  ;;  %v560_v41 = vcvt.s32.f32 %v553_v32  ;;  %v755_v44 = vsel %vm2500_vm4, 0, %v2499_v36  ;;  %v430_v62 = vmul.u32 %v3484_v27, %v414_v8  ;;  %1292 = vmatprep.mubr.f32.mxu1 %v3026_v33  ;;  %1490 = vmatprep.mubr.f32.mxu0 %v3026_v33 }
  0xe2   : > { %v756_v55 = vsub.s32 32, %v755_v44  ;;  %v757_v59 = vshll.u32 %v3482_v48, %v755_v44  ;;  %v760_v61 = vsub.s32 4294967266, %v755_v44  ;;  %v422_v48 = vsel %vm408_vm1, %v419_v53, %v421_v6 }
  0xe3   : > { %v558_v43 = vand.u32 2147483647, %v557_v50  ;;  %v3510_v13 = vmul.u32.u64.low %v3484_v27, %v422_v48  ;;  %v3511_v14 = vmul.u32.u64.high %v3484_v27, %v422_v48, %v3510_v13  ;;  %v433_v34 = vadd.s32 1, %v3517_v16 }
  0xe4   : > { %v758_v2 = vshrl.u32 %v740_v18, %v756_v55  ;;  %v761_v3 = vadd.s32 127, %v760_v61  ;;  %vm592_vm8 = vcmp.gt.s32.totalorder %v591_v31, 0  ;;  %v773_v36 = vsel %vm3537_vm7, 0, %v771_v28 }
  0xe5   : > { %v561_v1 = vmul.f32 %v560_v41, %v558_v43  ;;  %vm432_vm6 = vc.u32 %v3511_v14, %v3516_v15  ;;  %v593_v37 = vsel %vm592_vm8, %v591_v31, 0  ;;  %v985_v38 = vand.u32 3, %v984_v21 }
  0xe6   : > { %v759_v10 = vor.u32 %v758_v2, %v757_v59  ;;  %v762_v11 = vshll.u32 %v761_v3, 23  ;;  %v1192_v50 = vadd.s32 3, %v773_v36  ;;  %v434_v41 = vsel %vm432_vm6, %v433_v34, %v3517_v16 }
  0xe7   : > { %v562_v7 = vxor.u32 2147483648, %v561_v1  ;;  %v595_v0 = vand.u32 31, %v593_v37  ;;  %v435_v42 = vadd.s32 %v434_v41, %v430_v62  ;;  %v588_v29 = vand.u32 8388607, %v581_v26 }
  0xe8   : > { %v763_v19 = vor.u32 4788187, %v762_v11  ;;  %v766_v20 = vcvt.s32.f32 %v759_v10  ;;  %vm572_vm9 = vcmp.lt.s32.totalorder %v3533_v57, 2  ;;  %vm573_vm10 = vcmp.eq.s32.totalorder %v3533_v57, 0 }
  0xe9   : > { %v563_v18 = vsel %vm480_vm13, %v562_v7, %v561_v1  ;;  %vm576_vm11 = vcmp.eq.s32.totalorder %v3533_v57, 2  ;;  %vm570_vm12 = vweird.f32 %v3359_v22  ;;  %v3553_v44 = vand.u32 3, %v773_v36 }
  0xea   : > { %v566_v12 = vsel %vm3469_vm14, %v3359_v22, %v563_v18  ;;  %v764_v32 = vand.u32 2147483647, %v763_v19  ;;  %v436_v51 = vadd.s32 536870912, %v435_v42  ;;  %v596_v53 = vsub.s32 32, %v595_v0 }
  0xeb   : > { %2739 = vcosq.f32 %v566_v12  ;;  %vm986_vm13 = vcmp.lt.s32.totalorder %v985_v38, 2  ;;  %vm987_vm14 = vcmp.eq.s32.totalorder %v985_v38, 0  ;;  %v3558_v59 = vand.u32 3, %v1192_v50 }
  0xec   : > { %2741 = vsinq.f32 %v566_v12  ;;  %v767_v27 = vmul.f32 %v766_v20, %v764_v32  ;;  %vm990_vm15 = vcmp.eq.s32.totalorder %v985_v38, 2  ;;  %v3560_v61 = vshrl.u32 %v436_v51, 30 }
  0xed   : > { %v589_v63 = vor.u32 8388608, %v588_v29  ;;  %v3562_v47 = vshrl.u32 %v593_v37, 5  ;;  %v601_v39 = vshll.u32 %v3021_v54, %v595_v0  ;;  %v604_v40 = vshll.u32 %v3022_v56, %v595_v0 }
  0xee   : > { %v768_v49 = vxor.u32 2147483648, %v767_v27  ;;  %vm782_vm0 = vcmp.eq.s32.totalorder %v3553_v44, 2  ;;  %v438_v5 = vshll.u32 %v3560_v61, 30  ;;  %v607_v6 = vshll.u32 %v3023_v58, %v595_v0 }
  0xef   : > { %v608_v7 = vshrl.u32 %v3024_v60, %v596_v53  ;;  %vm779_vm1 = vcmp.eq.s32.totalorder %v3553_v44, 0  ;;  %vm1195_vm2 = vcmp.eq.s32.totalorder %v3558_v59, 0  ;;  %v602_v9 = vshrl.u32 %v3022_v56, %v596_v53 }
  0xf0   : > { %v769_v43 = vsel %vm686_vm3, %v768_v49, %v767_v27  ;;  %v610_v48 = vshll.u32 %v3024_v60, %v595_v0  ;;  %v611_v10 = vshrl.u32 %v3025_v4, %v596_v53  ;;  %vm778_vm3 = vcmp.lt.s32.totalorder %v3553_v44, 2 }
  0xf1   : > { %v772_v55 = vsel %vm3537_vm7, %v3362_v23, %v769_v43  ;;  %vm1194_vm4 = vcmp.lt.s32.totalorder %v3558_v59, 2  ;;  %v3580_v18 = vsub.s32 %v435_v42, %v438_v5  ;;  %v605_v16 = vshrl.u32 %v3023_v58, %v596_v53 }
  0xf2   : > { %2743 = vcosq.f32 %v772_v55  ;;  %vm776_vm5 = vweird.f32 %v3362_v23  ;;  %v598_v19 = vshll.u32 %v3020_v52, %v595_v0  ;;  %v599_v20 = vshrl.u32 %v3021_v54, %v596_v53 }
  0xf3   : > { %2745 = vsinq.f32 %v772_v55  ;;  %vm1198_vm6 = vcmp.eq.s32.totalorder %v3558_v59, 2  ;;  %v441_v28 = vsub.s32 0, %v3580_v18  ;;  %v609_v31 = vor.u32 %v608_v7, %v607_v6 }
  0xf4   : > { %v612_v45 = vor.u32 %v611_v10, %v610_v48  ;;  %vm616_vm7 = vcmp.lt.s32.totalorder %v3562_v47, 4  ;;  %v603_v27 = vor.u32 %v602_v9, %v601_v39  ;;  %v606_v36 = vor.u32 %v605_v16, %v604_v40 }
  0xf5   : > { %v2740_v1 = vpop.eup %2739  ;;  %v2486_v34 = vmin.u32 %v441_v28, %v3580_v18  ;;  %v629_v37 = vshll.u32 %v589_v63, 8  ;;  %v597_v38 = vshrl.u32 %v3020_v52, %v596_v53  ;;  %v600_v50 = vor.u32 %v599_v20, %v598_v19 }
  0xf6   : > { %v2742_v2 = vpop.eup %2741  ;;  %v577_v3 = vxor.u32 2147483648, %v2740_v1  ;;  %vm613_vm8 = vcmp.lt.s32.totalorder %v3562_v47, 1  ;;  %v622_v49 = vsel %vm616_vm7, %v609_v31, 920167782  ;;  %v618_v51 = vsel %vm616_vm7, %v606_v36, 2102212464 }
  0xf7   : > { %v574_v8 = vxor.u32 2147483648, %v2742_v2  ;;  %v443_v0 = vclz %v2486_v34  ;;  %v626_v53 = vsel %vm616_vm7, %v612_v45, 1326507024  ;;  %v625_v22 = vsel %vm613_vm8, %v603_v27, %v606_v36 }
  0xf8   : > { %v578_v11 = vsel %vm576_vm11, %v577_v3, %v2742_v2  ;;  %v992_v13 = vsel %vm990_vm15, %v577_v3, %v2742_v2  ;;  %v621_v2 = vsel %vm613_vm8, %v600_v50, %v603_v27  ;;  %v617_v7 = vsel %vm613_vm8, %v597_v38, %v600_v50 }
  0xf9   : > { %v575_v17 = vsel %vm573_vm10, %v2740_v1, %v574_v8  ;;  %v989_v12 = vsel %vm987_vm14, %v2740_v1, %v574_v8  ;;  %vm615_vm10 = vcmp.lt.s32.totalorder %v3562_v47, 3  ;;  %v2487_v63 = vadd.s32 4294967294, %v443_v0 }
  0xfa   : > { %v993_v21 = vsel %vm986_vm13, %v989_v12, %v992_v13  ;;  %v579_v32 = vsel %vm572_vm9, %v575_v17, %v578_v11  ;;  %vm614_vm9 = vcmp.lt.s32.totalorder %v3562_v47, 2  ;;  %v627_v1 = vsel %vm615_vm10, %v609_v31, %v626_v53 }
  0xfb   : > { %v994_v62 = vsel %vm570_vm12, nan, %v993_v21  ;;  %v580_v41 = vsel %vm570_vm12, nan, %v579_v32  ;;  %v623_v3 = vsel %vm615_vm10, %v606_v36, %v622_v49  ;;  %vm2488_vm11 = vcmp.lt.s32.totalorder %v2487_v63, 0 }
  0xfc   : > { %v2744_v57 = vpop.eup %2743  ;;  %v1204_v43 = vsub.f32 0.0, %v994_v62  ;;  %v446_v48 = vsel %vm2488_vm11, 0, %v2487_v63  ;;  %v628_v10 = vsel %vm614_vm9, %v625_v22, %v627_v1  ;;  %v619_v16 = vsel %vm615_vm10, %v603_v27, %v618_v51 }
  0xfd   : > { %v2746_v42 = vpop.eup %2745  ;;  %v783_v29 = vxor.u32 2147483648, %v2744_v57  ;;  %v624_v44 = vsel %vm614_vm9, %v621_v2, %v623_v3  ;;  %v451_v59 = vsub.s32 4294967266, %v446_v48  ;;  %v620_v21 = vsel %vm614_vm9, %v617_v7, %v619_v16 }
  0xfe   : > { %v780_v55 = vxor.u32 2147483648, %v2746_v42  ;;  %v3642_v19 = vmul.u32.u64.low %v629_v37, %v628_v10  ;;  %v3643_v20 = vmul.u32.u64.high %v629_v37, %v628_v10, %v3642_v19  ;;  %v431_v32 = vadd.s32 %v3516_v15, %v3511_v14 }
  0xff   : > { %v784_v39 = vsel %vm782_vm0, %v783_v29, %v2746_v42  ;;  %v1200_v40 = vsel %vm1198_vm6, %v783_v29, %v2746_v42  ;;  %v3647_v28 = vmul.u32.u64.low %v629_v37, %v624_v44  ;;  %v3648_v23 = vmul.u32.u64.high %v629_v37, %v624_v44, %v3647_v28 }
 0x100   : > { %v781_v5 = vsel %vm779_vm1, %v2744_v57, %v780_v55  ;;  %v1197_v6 = vsel %vm1195_vm2, %v2744_v57, %v780_v55  ;;  %v447_v62 = vsub.s32 32, %v446_v48  ;;  %v452_v45 = vadd.s32 127, %v451_v59 }
 0x101   : > { %v785_v8 = vsel %vm778_vm3, %v781_v5, %v784_v39  ;;  %v1201_v9 = vsel %vm1194_vm4, %v1197_v6, %v1200_v40  ;;  %v636_v34 = vmul.u32 %v629_v37, %v620_v21  ;;  %vm638_vm12 = vc.u32 %v3643_v20, %v3647_v28 }
 0x102   : > { %v786_v11 = vsel %vm776_vm5, nan, %v785_v8  ;;  %v1202_v13 = vsel %vm776_vm5, nan, %v1201_v9  ;;  %v639_v27 = vadd.s32 1, %v3648_v23  ;;  %v448_v47 = vshll.u32 %v3580_v18, %v446_v48 }
 0x103   : > { %v1206_v17 = vsub.f32 0.0, %v1202_v13  ;;  %v2563_v12 = vpack.c.bf16 %v786_v11, %v580_v41  ;;  %v449_v38 = vshrl.u32 %v431_v32, %v447_v62  ;;  %v453_v50 = vshll.u32 %v452_v45, 23 }
 0x104   : > { %v640_v36 = vsel %vm638_vm12, %v639_v27, %v3648_v23  ;;  %vm377_vm13 = vcmp.lt.s32.totalorder %v3379_v35, 0  ;;  %v637_v18 = vadd.s32 %v3647_v28, %v3643_v20  ;;  %vm3662_vm15 = vcmp.le.f32.partialorder %v375_v30, 0.7853982 }
 0x105   : > { %2564 = vmatprep.subr.bf16.mxu1 %v2563_v12  ;;  %2572 = vmatprep.subr.bf16.mxu0 %v2563_v12  ;;  %v3650_v31 = vpack.c.bf16 %v1206_v17, %v1204_v43  ;;  %v641_v57 = vadd.s32 %v640_v36, %v636_v34  ;;  %v450_v0 = vor.u32 %v449_v38, %v448_v47  ;;  %v454_v49 = vor.u32 4788187, %v453_v50 }
 0x106   : > { %v461_v8 = vsub.s32 4, %v3560_v61  ;;  %vm583_vm0 = vcmp.lt.s32.totalorder %v3463_v46, 0  ;;  %vm582_vm1 = vcmp.le.f32.partialorder %v581_v26, 0.7853982  ;;  %vm467_vm8 = vweird.f32 %v3379_v35 }
 0x107   : > { %v642_v41 = vadd.s32 536870912, %v641_v57  ;;  %v455_v14 = vand.u32 2147483647, %v454_v49  ;;  %v457_v15 = vcvt.s32.f32 %v450_v0 }
 0x108   : > { %v462_v13 = vsel %vm377_vm13, %v461_v8, %v3560_v61  ;;  %v1213_v8 = vld [vmem:[%s3349_s29 + $0x10] sm:$0xff] }
 0x109   : > { %v643_v42 = vshrl.u32 %v642_v41, 30  ;;  %v458_v51 = vmul.f32 %v457_v15, %v455_v14  ;;  %v464_v44 = vsel %vm3662_vm15, 0, %v462_v13 }
 0x10a   : > { %v880_v59 = vadd.s32 3, %v464_v44  ;;  %v468_v62 = vand.u32 3, %v464_v44 }
 0x10b   : > { %v644_v29 = vshll.u32 %v643_v42, 30  ;;  %v459_v63 = vxor.u32 2147483648, %v458_v51  ;;  %v667_v12 = vsub.s32 4, %v643_v42 }
 0x10c   : > { %v881_v23 = vand.u32 3, %v880_v59  ;;  %vm470_vm4 = vcmp.eq.s32.totalorder %v468_v62, 0  ;;  %vm473_vm5 = vcmp.eq.s32.totalorder %v468_v62, 2  ;;  %vm469_vm7 = vcmp.lt.s32.totalorder %v468_v62, 2 }
 0x10d   : > { %v645_v43 = vsub.s32 %v641_v57, %v644_v29  ;;  %v460_v40 = vsel %vm377_vm13, %v459_v63, %v458_v51  ;;  %v668_v21 = vsel %vm583_vm0, %v667_v12, %v643_v42 }
 0x10e   : > { %v463_v9 = vsel %vm3662_vm15, %v3379_v35, %v460_v40  ;;  %v670_v45 = vsel %vm582_vm1, 0, %v668_v21  ;;  %vm883_vm2 = vcmp.eq.s32.totalorder %v881_v23, 0  ;;  %vm886_vm3 = vcmp.eq.s32.totalorder %v881_v23, 2 }
 0x10f   : > { %v647_v37 = vsub.s32 0, %v645_v43  ;;  %2747 = vcosq.f32 %v463_v9  ;;  %v1088_v34 = vadd.s32 3, %v670_v45  ;;  %vm882_vm6 = vcmp.lt.s32.totalorder %v881_v23, 2 }
 0x110   : > { %2749 = vsinq.f32 %v463_v9  ;;  %v674_v26 = vand.u32 3, %v670_v45  ;;  %vm673_vm15 = vweird.f32 %v3463_v46  ;;  %v1210_v9 = vld [vmem:[%s3342_s15 + $0x18] sm:$0xff] }
 0x111   : > { %v2494_v53 = vmin.u32 %v647_v37, %v645_v43  ;;  %v1089_v50 = vand.u32 3, %v1088_v34 }
 0x112   : > { %vm679_vm10 = vcmp.eq.s32.totalorder %v674_v26, 2  ;;  %vm676_vm11 = vcmp.eq.s32.totalorder %v674_v26, 0  ;;  %vm675_vm13 = vcmp.lt.s32.totalorder %v674_v26, 2 }
 0x113   : > { %v649_v55 = vclz %v2494_v53  ;;  %vm1094_vm9 = vcmp.eq.s32.totalorder %v1089_v50, 2  ;;  %vm1091_vm12 = vcmp.eq.s32.totalorder %v1089_v50, 0 }
 0x115   : > { %v2495_v22 = vadd.s32 4294967294, %v649_v55 }
 0x117   : > { %vm2496_vm14 = vcmp.lt.s32.totalorder %v2495_v22, 0 }
 0x118   : > { %v652_v39 = vsel %vm2496_vm14, 0, %v2495_v22  ;;  %vm1090_vm14 = vcmp.lt.s32.totalorder %v1089_v50, 2 }
 0x119   : > { %v653_v2 = vsub.s32 32, %v652_v39  ;;  %v654_v3 = vshll.u32 %v645_v43, %v652_v39  ;;  %v657_v5 = vsub.s32 4294967266, %v652_v39  ;;  %v2748_v61 = vpop.eup %2747 }
 0x11a   : > { %v2750_v32 = vpop.eup %2749  ;;  %v474_v36 = vxor.u32 2147483648, %v2748_v61 }
 0x11b   : > { %v655_v6 = vshrl.u32 %v637_v18, %v653_v2  ;;  %v658_v7 = vadd.s32 127, %v657_v5  ;;  %v471_v27 = vxor.u32 2147483648, %v2750_v32  ;;  %v1211_v5 = vld [vmem:[%s3349_s29] sm:$0xff] }
 0x11c   : > { %v888_v38 = vsel %vm886_vm3, %v474_v36, %v2750_v32  ;;  %v475_v41 = vsel %vm473_vm5, %v474_v36, %v2750_v32  ;;  %v1732_v36 = vand.u32 2147483647, %v3366_v25 }
 0x11d   : > { %v656_v48 = vor.u32 %v655_v6, %v654_v3  ;;  %v659_v30 = vshll.u32 %v658_v7, 23  ;;  %v885_v47 = vsel %vm883_vm2, %v2748_v61, %v471_v27  ;;  %v472_v57 = vsel %vm470_vm4, %v2748_v61, %v471_v27  ;;  %v1208_v6 = vld [vmem:[%s3342_s15 + $0x8] sm:$0xff] }
 0x11e   : > { %v889_v0 = vsel %vm882_vm6, %v885_v47, %v888_v38  ;;  %v476_v29 = vsel %vm469_vm7, %v472_v57, %v475_v41  ;;  %v1212_v7 = vld [vmem:[%s3349_s29 + $0x8] sm:$0xff] }
 0x11f   : > { %v660_v10 = vor.u32 4788187, %v659_v30  ;;  %v663_v11 = vcvt.s32.f32 %v656_v48  ;;  %v890_v43 = vsel %vm467_vm8, nan, %v889_v0  ;;  %v477_v53 = vsel %vm467_vm8, nan, %v476_v29  ;;  %v1214_v48 = vld [vmem:[%s3349_s29 + $0x18] sm:$0xff] }
 0x120   : > { %v1203_v18 = vsub.f32 0.0, %v890_v43  ;;  %v1632_v30 = vand.u32 2139095040, %v3364_v24 }
 0x121   : > { %v661_v16 = vand.u32 2147483647, %v660_v10  ;;  %v1735_v10 = vand.u32 2139095040, %v3366_v25 }
 0x123   : > { %v664_v17 = vmul.f32 %v663_v11, %v661_v16  ;;  %v1633_v11 = vshrl.u32 %v1632_v30, 23  ;;  %v1736_v13 = vshrl.u32 %v1735_v10, 23 }
 0x125   : > { %v665_v19 = vxor.u32 2147483648, %v664_v17  ;;  %v2535_v16 = vadd.s32 4294967169, %v1633_v11  ;;  %v2539_v44 = vadd.s32 4294967169, %v1736_v13 }
 0x127   : > { %v666_v20 = vsel %vm583_vm0, %v665_v19, %v664_v17  ;;  %vm1215_vm0 = vcmask 130048   ;;  %v1639_v17 = vadd.s32 1, %v2535_v16  ;;  %v1742_v12 = vadd.s32 1, %v2539_v44 }
 0x128   : > { %v669_v28 = vsel %vm582_vm1, %v3463_v46, %v666_v20  ;;  %v1207_v46 = vld [vmem:[%s3342_s15] sm:$0xff] }
 0x129   : > { %2751 = vcosq.f32 %v669_v28  ;;  %vm1640_vm1 = vcmp.gt.s32.totalorder %v1639_v17, 0  ;;  %vm1743_vm2 = vcmp.gt.s32.totalorder %v1742_v12, 0 }
 0x12a   : > { %2753 = vsinq.f32 %v669_v28  ;;  %v1641_v59 = vsel %vm1640_vm1, %v1639_v17, 0  ;;  %v1744_v20 = vsel %vm1743_vm2, %v1742_v12, 0  ;;  %v1629_v28 = vand.u32 2147483647, %v3364_v24 }
 0x12b   : > { %v1643_v19 = vand.u32 31, %v1641_v59  ;;  %v3730_v61 = vshrl.u32 %v1641_v59, 5  ;;  %v3735_v45 = vshrl.u32 %v1744_v20, 5  ;;  %vm1733_vm2 = vcmp.le.f32.partialorder %v1732_v36, 0.7853982 }
 0x12c   : > { %v1636_v26 = vand.u32 8388607, %v1629_v28  ;;  %vm1630_vm1 = vcmp.le.f32.partialorder %v1629_v28, 0.7853982 }
 0x12d   : > { %v3725_v21 = vsub.s32 32, %v1643_v19  ;;  %v1655_v32 = vshll.u32 %v3023_v58, %v1643_v19  ;;  %v1658_v34 = vshll.u32 %v3024_v60, %v1643_v19  ;;  %v1646_v47 = vshll.u32 %v3020_v52, %v1643_v19 }
 0x12e   : > { %v1649_v50 = vshll.u32 %v3021_v54, %v1643_v19  ;;  %v1652_v41 = vshll.u32 %v3022_v56, %v1643_v19  ;;  %vm1664_vm3 = vcmp.lt.s32.totalorder %v3730_v61, 4  ;;  %vm1767_vm4 = vcmp.lt.s32.totalorder %v3735_v45, 4 }
 0x12f   : > { %v1656_v62 = vshrl.u32 %v3024_v60, %v3725_v21  ;;  %v1659_v27 = vshrl.u32 %v3025_v4, %v3725_v21  ;;  %v1647_v38 = vshrl.u32 %v3021_v54, %v3725_v21  ;;  %v1650_v57 = vshrl.u32 %v3022_v56, %v3725_v21 }
 0x130   : > { %vm1661_vm5 = vcmp.lt.s32.totalorder %v3730_v61, 1  ;;  %vm1663_vm6 = vcmp.lt.s32.totalorder %v3730_v61, 3  ;;  %vm1662_vm7 = vcmp.lt.s32.totalorder %v3730_v61, 2  ;;  %vm1764_vm8 = vcmp.lt.s32.totalorder %v3735_v45, 1 }
 0x131   : > { %v1657_v29 = vor.u32 %v1656_v62, %v1655_v32  ;;  %v1660_v43 = vor.u32 %v1659_v27, %v1658_v34 }
 0x133   : > { %v2752_v49 = vpop.eup %2751 }
 0x134   : > { %v2754_v42 = vpop.eup %2753  ;;  %v680_v14 = vxor.u32 2147483648, %v2752_v49 }
 0x135   : > { %v677_v15 = vxor.u32 2147483648, %v2754_v42 }
 0x136   : > { %v681_v37 = vsel %vm679_vm10, %v680_v14, %v2754_v42  ;;  %v1096_v51 = vsel %vm1094_vm9, %v680_v14, %v2754_v42  ;;  %v1653_v42 = vshrl.u32 %v3023_v58, %v3725_v21  ;;  %vm1766_vm10 = vcmp.lt.s32.totalorder %v3735_v45, 3 }
 0x137   : > { %v678_v55 = vsel %vm676_vm11, %v2752_v49, %v677_v15  ;;  %v1093_v35 = vsel %vm1091_vm12, %v2752_v49, %v677_v15  ;;  %vm1765_vm9 = vcmp.lt.s32.totalorder %v3735_v45, 2 }
 0x138   : > { %v682_v63 = vsel %vm675_vm13, %v678_v55, %v681_v37  ;;  %v1097_v22 = vsel %vm1090_vm14, %v1093_v35, %v1096_v51 }
 0x139   : > { %v683_v1 = vsel %vm673_vm15, nan, %v682_v63  ;;  %v1098_v39 = vsel %vm673_vm15, nan, %v1097_v22  ;;  %v1648_v63 = vor.u32 %v1647_v38, %v1646_v47  ;;  %vm1631_vm15 = vcmp.lt.s32.totalorder %v3364_v24, 0 }
 0x13a   : > { %v1205_v40 = vsub.f32 0.0, %v1098_v39  ;;  %v2565_v2 = vpack.c.bf16 %v683_v1, %v477_v53  ;;  %v1739_v1 = vand.u32 8388607, %v1732_v36 }
 0x13c   : > { %2566 = vmatpush1.bf16.msra.mxu1 %v2565_v2  ;;  %v2569_v3 = vpack.c.bf16 %v1205_v40, %v1203_v18  ;;  %2574 = vmatpush1.bf16.msra.mxu0 %v2565_v2  ;;  %v1654_v18 = vor.u32 %v1653_v42, %v1652_v41  ;;  %v1637_v40 = vor.u32 8388608, %v1636_v26 }
 0x13d   : > { %2568 = vmatprep.subr.bf16.mxu1 %v3650_v31  ;;  %2576 = vmatprep.subr.bf16.mxu0 %v3650_v31  ;;  %v1209_v31 = vld [vmem:[%s3342_s15 + $0x10] sm:$0xff] }
 0x13e   : > { %v1666_v34 = vsel %vm1664_vm3, %v1654_v18, 2102212464 }
 0x13f   : > { %2517 = vmatmul.mubr.msk.f32.vlgmr.msra.gmra.mrb[0].mxu1 %vm1215_vm0, %v1207_v46  ;;  %2525 = vmatmul.mubr.msk.f32.vlgmr.msra.gmra.mrb[0].mxu0 %vm1215_vm0, %v1211_v5 }
 0x140   : > { %2570 = vmatpush1.bf16.msra.mxu1 %v2569_v3  ;;  %1298 = vmatprep.mubr.f32.mxu1 %v3026_v33 }
 0x141   : > { %1496 = vmatprep.mubr.f32.mxu0 %v3026_v33  ;;  %2578 = vmatpush1.bf16.msra.mxu0 %v2569_v3 }
 0x143   : > { %2518 = vmatmul.mubr.msk.f32.gmra.mrb[2].mxu1 %vm1215_vm0, %v1208_v6  ;;  %2526 = vmatmul.mubr.msk.f32.gmra.mrb[2].mxu0 %vm1215_vm0, %v1212_v7 }
 0x144   : > { %1304 = vmatprep.mubr.f32.mxu1 %v3026_v33  ;;  %1502 = vmatprep.mubr.f32.mxu0 %v3026_v33 }
 0x147   : > { %2519 = vmatmul.mubr.msk.f32.gmra.mrb[4].mxu1 %vm1215_vm0, %v1209_v31  ;;  %2527 = vmatmul.mubr.msk.f32.gmra.mrb[4].mxu0 %vm1215_vm0, %v1213_v8 }
 0x148   : > { %1310 = vmatprep.mubr.f32.mxu1 %v3026_v33  ;;  %1508 = vmatprep.mubr.f32.mxu0 %v3026_v33 }
 0x14b   : > { %2520 = vmatmul.mubr.msk.f32.gmra.mrb[6].mxu1 %vm1215_vm0, %v1210_v9  ;;  %2528 = vmatmul.mubr.msk.f32.gmra.mrb[6].mxu0 %vm1215_vm0, %v1214_v48 }
 0x14c   : > { %1393 = vmatprep.mubr.f32.mxu1 %v3026_v33  ;;  %1579 = vmatprep.mubr.f32.mxu0 %v3026_v33 }
 0x14f   : > { %2521 = vmatmul.mubr.msk.f32.vlgmr.msra.gmra.mrb[8].mxu1 %vm1215_vm0, %v1211_v5  ;;  %2529 = vmatmul.mubr.msk.f32.vlgmr.msra.gmra.mrb[0].mxu0 %vm1215_vm0, %v1207_v46 }
 0x150   : > { %1399 = vmatprep.mubr.f32.mxu1 %v3026_v33  ;;  %1585 = vmatprep.mubr.f32.mxu0 %v3026_v33 }
 0x153   : > { %2522 = vmatmul.mubr.msk.f32.gmra.mrb[10].mxu1 %vm1215_vm0, %v1212_v7  ;;  %2530 = vmatmul.mubr.msk.f32.gmra.mrb[2].mxu0 %vm1215_vm0, %v1208_v6  ;;  %v1740_v7 = vor.u32 8388608, %v1739_v1 }
 0x154   : > { %1405 = vmatprep.mubr.f32.mxu1 %v3026_v33  ;;  %1591 = vmatprep.mubr.f32.mxu0 %v3026_v33 }
 0x155   : > { %v1780_v17 = vshll.u32 %v1740_v7, 8 }
 0x157   : > { %2523 = vmatmul.mubr.msk.f32.gmra.mrb[12].mxu1 %vm1215_vm0, %v1213_v8  ;;  %2531 = vmatmul.mubr.msk.f32.gmra.mrb[4].mxu0 %vm1215_vm0, %v1209_v31 }
 0x158   : > { %1411 = vmatprep.mubr.f32.mxu1 %v3026_v33  ;;  %1597 = vmatprep.mubr.f32.mxu0 %v3026_v33  ;;  %v1746_v33 = vand.u32 31, %v1744_v20 }
 0x15a   : > { %v3728_v23 = vsub.s32 32, %v1746_v33  ;;  %v1758_v0 = vshll.u32 %v3023_v58, %v1746_v33  ;;  %v1761_v14 = vshll.u32 %v3024_v60, %v1746_v33  ;;  %v1749_v37 = vshll.u32 %v3020_v52, %v1746_v33 }
 0x15b   : > { %2524 = vmatmul.mubr.msk.f32.gmra.mrb[14].mxu1 %vm1215_vm0, %v1214_v48  ;;  %2532 = vmatmul.mubr.msk.f32.gmra.mrb[6].mxu0 %vm1215_vm0, %v1210_v9  ;;  %v1752_v53 = vshll.u32 %v3021_v54, %v1746_v33  ;;  %v1755_v35 = vshll.u32 %v3022_v56, %v1746_v33  ;;  %v1677_v48 = vshll.u32 %v1637_v40, 8  ;;  %v1645_v33 = vshrl.u32 %v3020_v52, %v3725_v21 }
 0x15c   : > { %v1759_v49 = vshrl.u32 %v3024_v60, %v3728_v23  ;;  %v1762_v15 = vshrl.u32 %v3025_v4, %v3728_v23  ;;  %v1750_v51 = vshrl.u32 %v3021_v54, %v3728_v23  ;;  %v1753_v55 = vshrl.u32 %v3022_v56, %v3728_v23 }
 0x15d   : > { %v1756_v60 = vshrl.u32 %v3023_v58, %v3728_v23  ;;  %v1651_v4 = vor.u32 %v1650_v57, %v1649_v50  ;;  %v1670_v54 = vsel %vm1664_vm3, %v1657_v29, 920167782  ;;  %v1674_v56 = vsel %vm1664_vm3, %v1660_v43, 1326507024 }
 0x15e   : > { %v1760_v22 = vor.u32 %v1759_v49, %v1758_v0  ;;  %v1763_v39 = vor.u32 %v1762_v15, %v1761_v14  ;;  %v1751_v58 = vor.u32 %v1750_v51, %v1749_v37  ;;  %v1754_v2 = vor.u32 %v1753_v55, %v1752_v53 }
 0x15f   : > { %v1757_v3 = vor.u32 %v1756_v60, %v1755_v35  ;;  %v1669_v5 = vsel %vm1661_vm5, %v1648_v63, %v1651_v4  ;;  %v1671_v6 = vsel %vm1663_vm6, %v1654_v18, %v1670_v54  ;;  %v1673_v8 = vsel %vm1661_vm5, %v1651_v4, %v1654_v18 }
 0x160   : > { %v1773_v46 = vsel %vm1767_vm4, %v1760_v22, 920167782  ;;  %v1777_v31 = vsel %vm1767_vm4, %v1763_v39, 1326507024  ;;  %v1675_v9 = vsel %vm1663_vm6, %v1657_v29, %v1674_v56  ;;  %v1772_v30 = vsel %vm1764_vm8, %v1751_v58, %v1754_v2 }
 0x161   : > { %v1774_v10 = vsel %vm1766_vm10, %v1757_v3, %v1773_v46  ;;  %v1672_v11 = vsel %vm1662_vm7, %v1669_v5, %v1671_v6  ;;  %v1776_v13 = vsel %vm1764_vm8, %v1754_v2, %v1757_v3  ;;  %v1778_v16 = vsel %vm1766_vm10, %v1760_v22, %v1777_v31 }
 0x162   : > { %v1676_v44 = vsel %vm1662_vm7, %v1673_v8, %v1675_v9  ;;  %v1775_v12 = vsel %vm1765_vm9, %v1772_v30, %v1774_v10  ;;  %v3807_v59 = vmul.u32.u64.low %v1677_v48, %v1672_v11  ;;  %v3808_v19 = vmul.u32.u64.high %v1677_v48, %v1672_v11, %v3807_v59 }
 0x163   : > { %v1779_v20 = vsel %vm1765_vm9, %v1776_v13, %v1778_v16  ;;  %v3814_v32 = vmul.u32.u64.low %v1677_v48, %v1676_v44  ;;  %v3815_v62 = vmul.u32.u64.high %v1677_v48, %v1676_v44, %v3814_v32  ;;  %v1748_v47 = vshrl.u32 %v3020_v52, %v3728_v23 }
 0x164   : > { %v3819_v27 = vmul.u32.u64.low %v1780_v17, %v1775_v12  ;;  %v3820_v26 = vmul.u32.u64.high %v1780_v17, %v1775_v12, %v3819_v27  ;;  %v3824_v38 = vmul.u32.u64.low %v1780_v17, %v1779_v20  ;;  %v3825_v50 = vmul.u32.u64.high %v1780_v17, %v1779_v20, %v3824_v38 }
 0x165   : > { %v1769_v57 = vsel %vm1767_vm4, %v1757_v3, 2102212464  ;;  %v1665_v21 = vsel %vm1661_vm5, %v1645_v33, %v1648_v63  ;;  %v1667_v41 = vsel %vm1663_vm6, %v1651_v4, %v1666_v34  ;;  %v1768_v0 = vsel %vm1764_vm8, %v1748_v47, %v1751_v58 }
 0x166   : > { %v1770_v49 = vsel %vm1766_vm10, %v1754_v2, %v1769_v57  ;;  %v1668_v52 = vsel %vm1662_vm7, %v1665_v21, %v1667_v41  ;;  %v1687_v23 = vadd.s32 1, %v3808_v19  ;;  %vm1686_vm11 = vc.u32 %v3815_v62, %v3807_v59 }
 0x167   : > { %v1771_v42 = vsel %vm1765_vm9, %v1768_v0, %v1770_v49  ;;  %v1790_v29 = vadd.s32 1, %v3820_v26  ;;  %v1684_v14 = vmul.u32 %v1677_v48, %v1668_v52  ;;  %vm1789_vm12 = vc.u32 %v3825_v50, %v3819_v27 }
 0x168   : > { %v1688_v15 = vsel %vm1686_vm11, %v1687_v23, %v3808_v19  ;;  %v1787_v43 = vmul.u32 %v1780_v17, %v1771_v42  ;;  %v1685_v7 = vadd.s32 %v3807_v59, %v3815_v62  ;;  %v1788_v9 = vadd.s32 %v3819_v27, %v3825_v50 }
 0x169   : > { %v1791_v37 = vsel %vm1789_vm12, %v1790_v29, %v3820_v26  ;;  %v1689_v51 = vadd.s32 %v1688_v15, %v1684_v14  ;;  %vm1734_vm0 = vcmp.lt.s32.totalorder %v3366_v25, 0 }
 0x16a   : > { %v1792_v61 = vadd.s32 %v1791_v37, %v1787_v43 }
 0x16b   : > { %v1690_v53 = vadd.s32 536870912, %v1689_v51 }
 0x16c   : > { %v1793_v55 = vadd.s32 536870912, %v1792_v61 }
 0x16d   : > { %v1691_v35 = vshrl.u32 %v1690_v53, 30 }
 0x16e   : > { %v1794_v60 = vshrl.u32 %v1793_v55, 30 }
 0x16f   : > { %v1692_v63 = vshll.u32 %v1691_v35, 30  ;;  %v1715_v41 = vsub.s32 4, %v1691_v35 }
 0x170   : > { %v1795_v4 = vshll.u32 %v1794_v60, 30  ;;  %v1818_v0 = vsub.s32 4, %v1794_v60 }
 0x171   : > { %v1693_v45 = vsub.s32 %v1689_v51, %v1692_v63  ;;  %v1716_v52 = vsel %vm1631_vm15, %v1715_v41, %v1691_v35 }
 0x172   : > { %v1796_v22 = vsub.s32 %v1792_v61, %v1795_v4  ;;  %v1819_v23 = vsel %vm1734_vm0, %v1818_v0, %v1794_v60  ;;  %v1718_v42 = vsel %vm1630_vm1, 0, %v1716_v52 }
 0x173   : > { %v1695_v18 = vsub.s32 0, %v1693_v45  ;;  %v1821_v29 = vsel %vm1733_vm2, 0, %v1819_v23  ;;  %v1928_v28 = vadd.s32 3, %v1718_v42  ;;  %v1722_v51 = vand.u32 3, %v1718_v42 }
 0x174   : > { %v1798_v1 = vsub.s32 0, %v1796_v22  ;;  %v2032_v15 = vadd.s32 3, %v1821_v29  ;;  %v1825_v4 = vand.u32 3, %v1821_v29 }
 0x175   : > { %v2536_v39 = vmin.u32 %v1695_v18, %v1693_v45  ;;  %v1929_v53 = vand.u32 3, %v1928_v28  ;;  %vm1724_vm3 = vcmp.eq.s32.totalorder %v1722_v51, 0  ;;  %vm1727_vm4 = vcmp.eq.s32.totalorder %v1722_v51, 2 }
 0x176   : > { %v2540_v40 = vmin.u32 %v1798_v1, %v1796_v22  ;;  %vm1827_vm7 = vcmp.eq.s32.totalorder %v1825_v4, 0  ;;  %vm1830_vm8 = vcmp.eq.s32.totalorder %v1825_v4, 2  ;;  %vm1723_vm11 = vcmp.lt.s32.totalorder %v1722_v51, 2 }
 0x177   : > { %v1697_v54 = vclz %v2536_v39  ;;  %vm1931_vm5 = vcmp.eq.s32.totalorder %v1929_v53, 0  ;;  %vm1934_vm6 = vcmp.eq.s32.totalorder %v1929_v53, 2  ;;  %vm1930_vm12 = vcmp.lt.s32.totalorder %v1929_v53, 2 }
 0x178   : > { %v1800_v56 = vclz %v2540_v40 }
 0x179   : > { %v2537_v58 = vadd.s32 4294967294, %v1697_v54 }
 0x17a   : > { %v2541_v2 = vadd.s32 4294967294, %v1800_v56 }
 0x17b   : > { %vm2538_vm13 = vcmp.lt.s32.totalorder %v2537_v58, 0 }
 0x17c   : > { %vm2542_vm14 = vcmp.lt.s32.totalorder %v2541_v2, 0  ;;  %v1700_v3 = vsel %vm2538_vm13, 0, %v2537_v58  ;;  %vm1826_vm13 = vcmp.lt.s32.totalorder %v1825_v4, 2 }
 0x17d   : > { %v1803_v46 = vsel %vm2542_vm14, 0, %v2541_v2  ;;  %v1705_v5 = vsub.s32 4294967266, %v1700_v3  ;;  %v1701_v31 = vsub.s32 32, %v1700_v3  ;;  %v1702_v10 = vshll.u32 %v1693_v45, %v1700_v3 }
 0x17e   : > { %v1808_v6 = vsub.s32 4294967266, %v1803_v46  ;;  %v1804_v48 = vsub.s32 32, %v1803_v46  ;;  %v1805_v16 = vshll.u32 %v1796_v22, %v1803_v46  ;;  %v2033_v45 = vand.u32 3, %v2032_v15 }
 0x17f   : > { %v1706_v8 = vadd.s32 127, %v1705_v5  ;;  %v1703_v11 = vshrl.u32 %v1685_v7, %v1701_v31 }
 0x180   : > { %v1809_v30 = vadd.s32 127, %v1808_v6  ;;  %v1806_v44 = vshrl.u32 %v1788_v9, %v1804_v48  ;;  %vm2035_vm10 = vcmp.eq.s32.totalorder %v2033_v45, 0  ;;  %vm2038_vm9 = vcmp.eq.s32.totalorder %v2033_v45, 2 }
 0x181   : > { %v1707_v13 = vshll.u32 %v1706_v8, 23  ;;  %v1704_v12 = vor.u32 %v1703_v11, %v1702_v10  ;;  %vm2034_vm14 = vcmp.lt.s32.totalorder %v2033_v45, 2 }
 0x182   : > { %v1810_v17 = vshll.u32 %v1809_v30, 23  ;;  %v1807_v20 = vor.u32 %v1806_v44, %v1805_v16 }
 0x183   : > { %v1708_v19 = vor.u32 4788187, %v1707_v13  ;;  %v1711_v34 = vcvt.s32.f32 %v1704_v12 }
 0x184   : > { %v1811_v33 = vor.u32 4788187, %v1810_v17  ;;  %v1814_v59 = vcvt.s32.f32 %v1807_v20 }
 0x185   : > { %v1709_v32 = vand.u32 2147483647, %v1708_v19 }
 0x186   : > { %v1812_v26 = vand.u32 2147483647, %v1811_v33 }
 0x187   : > { %v1712_v62 = vmul.f32 %v1711_v34, %v1709_v32 }
 0x188   : > { %v1815_v47 = vmul.f32 %v1814_v59, %v1812_v26 }
 0x189   : > { %v1713_v38 = vxor.u32 2147483648, %v1712_v62 }
 0x18a   : > { %v1816_v27 = vxor.u32 2147483648, %v1815_v47 }
 0x18b   : > { %v1714_v50 = vsel %vm1631_vm15, %v1713_v38, %v1712_v62  ;;  %vm1721_vm15 = vweird.f32 %v3364_v24 }
 0x18c   : > { %v1817_v57 = vsel %vm1734_vm0, %v1816_v27, %v1815_v47  ;;  %v1717_v21 = vsel %vm1630_vm1, %v3364_v24, %v1714_v50  ;;  %vm1824_vm0 = vweird.f32 %v3366_v25  ;;  %vm2129_vm1 = vcmask 1041409  }
 0x18d   : > { %v1820_v49 = vsel %vm1733_vm2, %v3366_v25, %v1817_v57  ;;  %2755 = vcosq.f32 %v1717_v21  ;;  %vm2131_vm2 = vcmask 1045509  }
 0x18e   : > { %2757 = vsinq.f32 %v1717_v21 }
 0x18f   : > { %2759 = vcosq.f32 %v1820_v49 }
 0x190   : > { %2761 = vsinq.f32 %v1820_v49 }
 0x197   : > { %v2756_v43 = vpop.eup %2755 }
 0x198   : > { %v2758_v37 = vpop.eup %2757  ;;  %v1728_v35 = vxor.u32 2147483648, %v2756_v43 }
 0x199   : > { %v2760_v61 = vpop.eup %2759  ;;  %v1725_v60 = vxor.u32 2147483648, %v2758_v37 }
 0x19a   : > { %v2762_v55 = vpop.eup %2761  ;;  %v1831_v1 = vxor.u32 2147483648, %v2760_v61  ;;  %v1729_v54 = vsel %vm1727_vm4, %v1728_v35, %v2758_v37  ;;  %v1936_v2 = vsel %vm1934_vm6, %v1728_v35, %v2758_v37  ;;  %vm2136_vm4 = vcmask 1046534  }
 0x19b   : > { %v1828_v18 = vxor.u32 2147483648, %v2762_v55  ;;  %v1726_v56 = vsel %vm1724_vm3, %v2756_v43, %v1725_v60  ;;  %v1933_v58 = vsel %vm1931_vm5, %v2756_v43, %v1725_v60  ;;  %vm2134_vm3 = vcmask 1042434  }
 0x19c   : > { %v1832_v46 = vsel %vm1830_vm8, %v1831_v1, %v2762_v55  ;;  %v2040_v6 = vsel %vm2038_vm9, %v1831_v1, %v2762_v55  ;;  %v1730_v8 = vsel %vm1723_vm11, %v1726_v56, %v1729_v54  ;;  %v1937_v9 = vsel %vm1930_vm12, %v1933_v58, %v1936_v2 }
 0x19d   : > { %v1829_v3 = vsel %vm1827_vm7, %v2760_v61, %v1828_v18  ;;  %v2037_v5 = vsel %vm2035_vm10, %v2760_v61, %v1828_v18  ;;  %v3870_v11 = vsel %vm1721_vm15, nan, %v1730_v8  ;;  %v3872_v13 = vsel %vm1721_vm15, nan, %v1937_v9 }
 0x19e   : > { %v1833_v48 = vsel %vm1826_vm13, %v1829_v3, %v1832_v46  ;;  %v2041_v30 = vsel %vm2034_vm14, %v2037_v5, %v2040_v6  ;;  %vm2139_vm5 = vcmask 1043459   ;;  %vm2141_vm6 = vcmask 1047559  }
 0x19f   : > { %v3874_v12 = vsel %vm1824_vm0, nan, %v1833_v48  ;;  %v3876_v19 = vsel %vm1824_vm0, nan, %v2041_v30 }
 0x212   : > { %v1294_v14 = vpop.f32.mrb[0].mxu1 }
 0x213   : > { %v1296_v36 = vpop.f32.mrb[1].mxu1 }
 0x216   : > { %v1300_v63 = vpop.f32.mrb[2].mxu1 }
 0x217   : > { %v3857_v22 = vpop.f32.mrb[3].mxu1 }
 0x21a   : > { %v3859_v39 = vpop.f32.mrb[4].mxu1 }
 0x21b   : > { %v3861_v40 = vpop.f32.mrb[5].mxu1 }
 0x21e   : > { %v3864_v7 = vpop.f32.mrb[6].mxu1 }
 0x21f   : > { %v3866_v31 = vpop.f32.mrb[7].mxu1 }
 0x222   : > { %v1395_v10 = vpop.f32.mrb[8].mxu1  ;;  %v1581_v16 = vpop.f32.mrb[0].mxu0 }
 0x223   : > { %v1418_v44 = vsub.f32 %v1294_v14, %v1395_v10  ;;  %v1397_v17 = vpop.f32.mrb[9].mxu1  ;;  %v1583_v20 = vpop.f32.mrb[1].mxu0  ;;  %v2052_v32 = vmul.f32 %v3872_v13, %v1581_v16  ;;  %v2147_v34 = vmul.f32 %v3870_v11, %v1581_v16 }
 0x224   : > { %v1419_v24 = vsub.f32 %v1296_v36, %v1397_v17  ;;  %v2053_v62 = vmul.f32 %v3876_v19, %v1583_v20  ;;  %v2148_v47 = vmul.f32 %v3874_v12, %v1583_v20 }
 0x225   : > { %v2044_v33 = vmul.f32 %v3870_v11, %v1418_v44  ;;  %v2155_v25 = vmul.f32 %v3872_v13, %v1418_v44 }
 0x226   : > { %v2045_v26 = vmul.f32 %v3874_v12, %v1419_v24  ;;  %v2156_v59 = vmul.f32 %v3876_v19, %v1419_v24  ;;  %v1401_v38 = vpop.f32.mrb[10].mxu1  ;;  %v1587_v27 = vpop.f32.mrb[2].mxu0 }
 0x227   : > { %v2060_v50 = vadd.f32 %v2052_v32, %v2044_v33  ;;  %v2163_v57 = vsub.f32 %v2147_v34, %v2155_v25  ;;  %v1420_v21 = vsub.f32 %v1300_v63, %v1401_v38  ;;  %v2054_v41 = vmul.f32 %v3872_v13, %v1587_v27  ;;  %v1403_v0 = vpop.f32.mrb[11].mxu1  ;;  %v1589_v49 = vpop.f32.mrb[3].mxu0 }
 0x228   : > { %v2061_v52 = vadd.f32 %v2053_v62, %v2045_v26  ;;  %v2164_v23 = vsub.f32 %v2148_v47, %v2156_v59  ;;  %v2149_v42 = vmul.f32 %v3870_v11, %v1587_v27  ;;  %v1421_v29 = vsub.f32 %v3857_v22, %v1403_v0 }
 0x229   : > { %v2068_v28 = vrot.slane %v2060_v50, 4  ;;  %v2171_v14 = vrot.slane %v2163_v57, 4  ;;  %v2046_v15 = vmul.f32 %v3870_v11, %v1420_v21  ;;  %v2157_v43 = vmul.f32 %v3872_v13, %v1420_v21 }
 0x22a   : > { %v2074_v36 = vrot.slane %v2061_v52, 4  ;;  %v2177_v37 = vrot.slane %v2164_v23, 4  ;;  %v2047_v51 = vmul.f32 %v3874_v12, %v1421_v29  ;;  %v2158_v61 = vmul.f32 %v3876_v19, %v1421_v29  ;;  %v1407_v53 = vpop.f32.mrb[12].mxu1  ;;  %v3893_v55 = vpop.f32.mrb[4].mxu0 }
 0x22b   : > { %v2069_v63 = vadd.f32 %v2068_v28, %v2060_v50  ;;  %v2172_v4 = vadd.f32 %v2171_v14, %v2163_v57  ;;  %v2062_v45 = vadd.f32 %v2054_v41, %v2046_v15  ;;  %v2165_v35 = vsub.f32 %v2149_v42, %v2157_v43  ;;  %v1409_v22 = vpop.f32.mrb[13].mxu1  ;;  %v1595_v60 = vpop.f32.mrb[5].mxu0 }
 0x22c   : > { %v2075_v18 = vadd.f32 %v2074_v36, %v2061_v52  ;;  %v2178_v1 = vadd.f32 %v2177_v37, %v2164_v23  ;;  %v2055_v54 = vmul.f32 %v3876_v19, %v1589_v49  ;;  %v2150_v56 = vmul.f32 %v3874_v12, %v1589_v49 }
 0x22d   : > { %v2070_v58 = vrot.slane %v2069_v63, 2  ;;  %v2173_v2 = vrot.slane %v2172_v4, 2  ;;  %v2080_v3 = vrot.slane %v2062_v45, 4  ;;  %v2183_v46 = vrot.slane %v2165_v35, 4 }
 0x22e   : > { %v2076_v5 = vrot.slane %v2075_v18, 2  ;;  %v2179_v6 = vrot.slane %v2178_v1, 2  ;;  %v2063_v8 = vadd.f32 %v2055_v54, %v2047_v51  ;;  %v2166_v9 = vsub.f32 %v2150_v56, %v2158_v61  ;;  %v1413_v48 = vpop.f32.mrb[14].mxu1  ;;  %v3897_v30 = vpop.f32.mrb[6].mxu0 }
 0x22f   : > { %v2071_v10 = vadd.f32 %v2070_v58, %v2069_v63  ;;  %v2174_v16 = vadd.f32 %v2173_v2, %v2172_v4  ;;  %v2081_v44 = vadd.f32 %v2080_v3, %v2062_v45  ;;  %v2184_v17 = vadd.f32 %v2183_v46, %v2165_v35  ;;  %v3899_v20 = vpop.f32.mrb[15].mxu1  ;;  %v3901_v24 = vpop.f32.mrb[7].mxu0 }
 0x230   : > { %v2077_v33 = vadd.f32 %v2076_v5, %v2075_v18  ;;  %v2180_v25 = vadd.f32 %v2179_v6, %v2178_v1  ;;  %v2086_v32 = vrot.slane %v2063_v8, 4  ;;  %v2189_v34 = vrot.slane %v2166_v9, 4 }
 0x231   : > { %v2072_v26 = vrot.slane %v2071_v10, 1  ;;  %v2175_v59 = vrot.slane %v2174_v16, 1  ;;  %v2082_v62 = vrot.slane %v2081_v44, 2  ;;  %v2185_v47 = vrot.slane %v2184_v17, 2 }
 0x232   : > { %v2078_v38 = vrot.slane %v2077_v33, 1  ;;  %v2181_v27 = vrot.slane %v2180_v25, 1  ;;  %v2087_v50 = vadd.f32 %v2086_v32, %v2063_v8  ;;  %v2190_v57 = vadd.f32 %v2189_v34, %v2166_v9 }
 0x233   : > { %v2073_v21 = vadd.f32 %v2072_v26, %v2071_v10  ;;  %v2176_v41 = vadd.f32 %v2175_v59, %v2174_v16  ;;  %v2083_v0 = vadd.f32 %v2082_v62, %v2081_v44  ;;  %v2186_v49 = vadd.f32 %v2185_v47, %v2184_v17 }
 0x234   : > { %v2079_v52 = vadd.f32 %v2078_v38, %v2077_v33  ;;  %v2182_v23 = vadd.f32 %v2181_v27, %v2180_v25  ;;  %v2088_v42 = vrot.slane %v2087_v50, 2  ;;  %v2191_v29 = vrot.slane %v2190_v57, 2 }
 0x235   : > { %v2084_v28 = vrot.slane %v2083_v0, 1  ;;  %v2187_v14 = vrot.slane %v2186_v49, 1  ;;  %v1422_v15 = vsub.f32 %v3859_v39, %v1407_v53  ;;  %v2056_v43 = vmul.f32 %v3872_v13, %v3893_v55 }
 0x236   : > { %v2124_v36 = vcombine.low %v2073_v21, %v2079_v52  ;;  %v2227_v37 = vcombine.low %v2176_v41, %v2182_v23  ;;  %v2089_v51 = vadd.f32 %v2088_v42, %v2087_v50  ;;  %v2192_v61 = vadd.f32 %v2191_v29, %v2190_v57 }
 0x237   : > { %v2085_v63 = vadd.f32 %v2084_v28, %v2083_v0  ;;  %v2188_v4 = vadd.f32 %v2187_v14, %v2186_v49  ;;  %v2048_v45 = vmul.f32 %v3870_v11, %v1422_v15  ;;  %v2159_v35 = vmul.f32 %v3872_v13, %v1422_v15 }
 0x238   : > { %v2090_v18 = vrot.slane %v2089_v51, 1  ;;  %v2193_v1 = vrot.slane %v2192_v61, 1  ;;  %v2151_v54 = vmul.f32 %v3870_v11, %v3893_v55  ;;  %v1423_v39 = vsub.f32 %v3861_v40, %v1409_v22 }
 0x239   : > { %v2064_v53 = vadd.f32 %v2056_v43, %v2048_v45  ;;  %v2057_v56 = vmul.f32 %v3876_v19, %v1595_v60  ;;  %v2152_v58 = vmul.f32 %v3874_v12, %v1595_v60  ;;  %v1424_v2 = vsub.f32 %v3864_v7, %v1413_v48 }
 0x23a   : > { %v2091_v3 = vadd.f32 %v2090_v18, %v2089_v51  ;;  %v2194_v46 = vadd.f32 %v2193_v1, %v2192_v61  ;;  %v2167_v5 = vsub.f32 %v2151_v54, %v2159_v35  ;;  %v2049_v6 = vmul.f32 %v3874_v12, %v1423_v39 }
 0x23b   : > { %v2092_v8 = vrot.slane %v2064_v53, 4  ;;  %v2160_v9 = vmul.f32 %v3876_v19, %v1423_v39  ;;  %v2050_v10 = vmul.f32 %v3870_v11, %v1424_v2  ;;  %v2161_v55 = vmul.f32 %v3872_v13, %v1424_v2 }
 0x23c   : > { %v2125_v40 = vcombine.low %v2085_v63, %v2091_v3  ;;  %v2228_v22 = vcombine.low %v2188_v4, %v2194_v46  ;;  %v2195_v16 = vrot.slane %v2167_v5, 4  ;;  %v2065_v44 = vadd.f32 %v2057_v56, %v2049_v6 }
 0x23d   : > { %v2093_v17 = vadd.f32 %v2092_v8, %v2064_v53  ;;  %v2168_v60 = vsub.f32 %v2152_v58, %v2160_v9  ;;  %v2058_v7 = vmul.f32 %v3872_v13, %v3897_v30  ;;  %v2153_v48 = vmul.f32 %v3870_v11, %v3897_v30 }
 0x23e   : > { %v2128_v33 = vrot.slane %v2125_v40, 7  ;;  %v2231_v25 = vrot.slane %v2228_v22, 7  ;;  %v2196_v32 = vadd.f32 %v2195_v16, %v2167_v5  ;;  %v2098_v34 = vrot.slane %v2065_v44, 4 }
 0x23f   : > { %v2094_v26 = vrot.slane %v2093_v17, 2  ;;  %v2201_v59 = vrot.slane %v2168_v60, 4  ;;  %v2066_v62 = vadd.f32 %v2058_v7, %v2050_v10  ;;  %v2169_v47 = vsub.f32 %v2153_v48, %v2161_v55 }
 0x240   : > { %v2130_v38 = vsel %vm2129_vm1, %v2128_v33, %v2124_v36  ;;  %v2232_v27 = vsel %vm2129_vm1, %v2231_v25, %v2227_v37  ;;  %v2197_v50 = vrot.slane %v2196_v32, 2  ;;  %v2099_v57 = vadd.f32 %v2098_v34, %v2065_v44 }
 0x241   : > { %v2132_v21 = vsel %vm2131_vm2, %v2128_v33, %v2130_v38  ;;  %v2233_v13 = vsel %vm2131_vm2, %v2231_v25, %v2232_v27  ;;  %v2095_v41 = vadd.f32 %v2094_v26, %v2093_v17  ;;  %v2202_v11 = vadd.f32 %v2201_v59, %v2168_v60 }
 0x242   : > { %v2198_v30 = vadd.f32 %v2197_v50, %v2196_v32  ;;  %v2100_v0 = vrot.slane %v2099_v57, 2  ;;  %v2104_v49 = vrot.slane %v2066_v62, 4  ;;  %v2207_v52 = vrot.slane %v2169_v47, 4 }
 0x243   : > { %v2096_v23 = vrot.slane %v2095_v41, 1  ;;  %v2203_v42 = vrot.slane %v2202_v11, 2  ;;  %v1425_v29 = vsub.f32 %v3866_v31, %v3899_v20  ;;  %v2059_v61 = vmul.f32 %v3876_v19, %v3901_v24 }
 0x244   : > { %v2199_v28 = vrot.slane %v2198_v30, 1  ;;  %v2101_v14 = vadd.f32 %v2100_v0, %v2099_v57  ;;  %v2105_v15 = vadd.f32 %v2104_v49, %v2066_v62  ;;  %v2208_v43 = vadd.f32 %v2207_v52, %v2169_v47  ;;  %v2043_v47 = vld [vmem:[#allocation2] sm:$0xff]  ;;  %v2146_v57 = vld [vmem:[#allocation3] sm:$0xff] }
 0x245   : > { %v2204_v36 = vadd.f32 %v2203_v42, %v2202_v11  ;;  %v2051_v37 = vmul.f32 %v3874_v12, %v1425_v29  ;;  %v2162_v51 = vmul.f32 %v3876_v19, %v1425_v29  ;;  %v2097_v63 = vadd.f32 %v2096_v23, %v2095_v41 }
 0x246   : > { %v2102_v4 = vrot.slane %v2101_v14, 1  ;;  %v2106_v45 = vrot.slane %v2105_v15, 2  ;;  %v2209_v35 = vrot.slane %v2208_v43, 2  ;;  %v2200_v18 = vadd.f32 %v2199_v28, %v2198_v30 }
 0x247   : > { %v2205_v1 = vrot.slane %v2204_v36, 1  ;;  %v2067_v54 = vadd.f32 %v2059_v61, %v2051_v37  ;;  %v2154_v31 = vmul.f32 %v3874_v12, %v3901_v24 }
 0x248   : > { %v2103_v20 = vadd.f32 %v2102_v4, %v2101_v14  ;;  %v2107_v53 = vadd.f32 %v2106_v45, %v2105_v15  ;;  %v2210_v3 = vadd.f32 %v2209_v35, %v2208_v43 }
 0x249   : > { %v2206_v39 = vadd.f32 %v2205_v1, %v2204_v36  ;;  %v2110_v56 = vrot.slane %v2067_v54, 4  ;;  %v2170_v58 = vsub.f32 %v2154_v31, %v2162_v51 }
 0x24a   : > { %v2126_v2 = vcombine.low %v2097_v63, %v2103_v20  ;;  %v2108_v9 = vrot.slane %v2107_v53, 1  ;;  %v2211_v22 = vrot.slane %v2210_v3, 1 }
 0x24b   : > { %v2229_v46 = vcombine.low %v2200_v18, %v2206_v39  ;;  %v2111_v19 = vadd.f32 %v2110_v56, %v2067_v54  ;;  %v2213_v5 = vrot.slane %v2170_v58, 4 }
 0x24c   : > { %v2133_v6 = vrot.slane %v2126_v2, 6  ;;  %v2109_v60 = vadd.f32 %v2108_v9, %v2107_v53  ;;  %v2212_v33 = vadd.f32 %v2211_v22, %v2210_v3 }
 0x24d   : > { %v2234_v8 = vrot.slane %v2229_v46, 6  ;;  %v2112_v10 = vrot.slane %v2111_v19, 2  ;;  %v2214_v55 = vadd.f32 %v2213_v5, %v2170_v58 }
 0x24e   : > { %v2135_v40 = vsel %vm2134_vm3, %v2133_v6, %v2132_v21 }
 0x24f   : > { %v2137_v12 = vsel %vm2136_vm4, %v2133_v6, %v2135_v40  ;;  %v2235_v24 = vsel %vm2134_vm3, %v2234_v8, %v2233_v13  ;;  %v2113_v16 = vadd.f32 %v2112_v10, %v2111_v19  ;;  %v2215_v44 = vrot.slane %v2214_v55, 2 }
 0x250   : > { %v2236_v17 = vsel %vm2136_vm4, %v2234_v8, %v2235_v24 }
 0x251   : > { %v2114_v7 = vrot.slane %v2113_v16, 1  ;;  %v2216_v48 = vadd.f32 %v2215_v44, %v2214_v55 }
 0x253   : > { %v2115_v25 = vadd.f32 %v2114_v7, %v2113_v16  ;;  %v2217_v32 = vrot.slane %v2216_v48, 1 }
 0x255   : > { %v2127_v34 = vcombine.low %v2109_v60, %v2115_v25  ;;  %v2218_v26 = vadd.f32 %v2217_v32, %v2216_v48 }
 0x257   : > { %v2138_v59 = vrot.slane %v2127_v34, 5  ;;  %v2230_v62 = vcombine.low %v2212_v33, %v2218_v26 }
 0x259   : > { %v2140_v38 = vsel %vm2139_vm5, %v2138_v59, %v2137_v12  ;;  %v2237_v27 = vrot.slane %v2230_v62, 5  ;;  %2246 = sbr.rel (%p2551_p12) target bundleno = 618 (0x26a), region = 52 }
 0x25a   : > { %v2142_v50 = vsel %vm2141_vm6, %v2138_v59, %v2140_v38 }
 0x25b   : > { %v2144_v21 = vadd.f32 %v2142_v50, %v2043_v47  ;;  %v2238_v13 = vsel %vm2139_vm5, %v2237_v27, %v2236_v17 }
 0x25c   : > { %v2239_v41 = vsel %vm2141_vm6, %v2237_v27, %v2238_v13 }
 0x25d   : > { %2145 = vst [vmem:[#allocation2] sm:$0xff] %v2144_v21  ;;  %v2241_v11 = vadd.f32 %v2239_v41, %v2146_v57 }
 0x25f   : > { %2242 = vst [vmem:[#allocation3] sm:$0xff] %v2241_v11 }
 0x264   : > { %v2247_v30 = vld [vmem:[#allocation2] sm:$0xff] }
 0x265   : > { %v2248_v49 = vmul.f32 0.0625, %v2247_v30 }
 0x266   : > { %v2250_v0 = vld [vmem:[#allocation3] sm:$0xff] }
 0x267   : > { %v2251_v52 = vmul.f32 0.0625, %v2250_v0  ;;  %2249 = vst [vmem:[%s3351_s27] sm:$0xff] %v2248_v49 }
 0x269   : > { %2252 = vst [vmem:[%s3353_s4] sm:$0xff] %v2251_v52 }
 0x26a PF: > { %s2561_s23 = sshll.u32 %s2999_s22, 7  ;;  %s4087_s21 = sld [smem:[#allocation26_spill]] }
 0x26b   : > { %s2275_s12 = sshll.u32 %s3351_s27, 4  ;;  %s2254_s24 = scalar_lea.sflag [#allocation6], %s3332_s2  ;;  %s2276_s12 = int_to_ptr.vmem [resolvable:$true] %s2275_s12 }
 0x26c   : > { %s2853_s9 = scalar_lea.vmem %s2276_s12, 128  ;;  %p4089_p0 = scmp.ne.s32.totalorder %s4066_s28, 0 }
 0x26d   : > { %p2854_p13 = scmp.ne.s32.totalorder %s2276_s12, %s2853_s9  ;;  %s3027_s26 = smov [#allocation10]  }
 0x26e   : > { %s2857_s8 = sshll.u32 %s3027_s26, 4  ;;  %s2858_s8 = int_to_ptr.vmem [resolvable:$false] %s2857_s8 }
 0x26f   : > { %p2855_p11 = pnand %p2854_p13, %p4089_p0  ;;  %s2859_s10 = scalar_lea.vmem %s2858_s8, 256 }
 0x270   : > { %s4088_s30 = smov %s4087_s21  ;;  %s3943_s17 = scalar_lea.hbm %s4087_s21, %s2561_s23 }
 0x271   : > { %p2856_p3 = pneg %p2855_p11  ;;  %p2860_p4 = scmp.lt.s32.totalorder %s2276_s12, %s2858_s8 }
 0x272   : > { %p2861_p7 = scmp.lt.s32.totalorder %s2859_s10, %s2853_s9 }
 0x274   : > { %p2862_p1 = por %p2861_p7, %p2860_p4 }
 0x276   : > { %p2863_p2 = pnand %p2862_p1, %p2856_p3 }
 0x278   : > { %2866 = shalt.err (!%p2863_p2)
}
 0x279   : > { %s2867_s13 = scalar_lea.hbm %s3943_s17, 128  ;;  %s2871_s29 = scalar_lea.hbm %s4088_s30, 256 }
 0x27a   : > { %p2868_p8 = scmp.ne.s32.totalorder %s3943_s17, %s2867_s13  ;;  %p2872_p6 = scmp.lt.u32.totalorder %s3943_s17, %s4088_s30 }
 0x27b   : > { %p2873_p5 = scmp.lt.u32.totalorder %s2871_s29, %s2867_s13  ;;  %p2875_p13 = scmp.lt.u32.totalorder %s2867_s13, %s3943_s17 }
 0x27c   : > { %p2869_p10 = pnand %p2868_p8, %p4089_p0 }
 0x27d   : > { %p2874_p12 = por %p2873_p5, %p2872_p6 }
 0x27e   : > { %p2870_p9 = pneg %p2869_p10 }
 0x27f   : > { %p2876_p11 = por %p2875_p13, %p2874_p12 }
 0x281   : > { %p2877_p3 = pnand %p2876_p11, %p2870_p9 }
 0x283   : > { %2880 = shalt.err (!%p2877_p3)
}
 0x284   : > { %2617 = dma.vmem_to_hbm [thread:$0]  (%p4089_p0), %s2276_s12, 128, %s3943_s17, %s2254_s24  }
 0x285   : > { %s4090_s1 = sld [smem:[#allocation27_spill]]  ;;  %s2291_s21 = sshll.u32 %s3353_s4, 4  ;;  %s2292_s21 = int_to_ptr.vmem [resolvable:$true] %s2291_s21 }
 0x286   : > { %s2259_s9 = scalar_lea.sflag [#allocation12], %s3332_s2  ;;  %s2881_s26 = scalar_lea.vmem %s2292_s21, 128 }
 0x287   : > { %p2882_p4 = scmp.ne.s32.totalorder %s2292_s21, %s2881_s26  ;;  %s3028_s8 = smov [#allocation11]  }
 0x288   : > { %s2885_s10 = sshll.u32 %s3028_s8, 4  ;;  %s2886_s10 = int_to_ptr.vmem [resolvable:$false] %s2885_s10 }
 0x289   : > { %p2883_p7 = pnand %p2882_p4, %p4089_p0  ;;  %s2887_s13 = scalar_lea.vmem %s2886_s10, 256 }
 0x28a   : > { %p2888_p2 = scmp.lt.s32.totalorder %s2292_s21, %s2886_s10  ;;  %p2889_p8 = scmp.lt.s32.totalorder %s2887_s13, %s2881_s26 }
 0x28b   : > { %s3969_s3 = scalar_lea.hbm %s4090_s1, %s2561_s23  ;;  %p2884_p1 = pneg %p2883_p7 }
 0x28c   : > { %p2890_p10 = por %p2889_p8, %p2888_p2 }
 0x28e   : > { %p2891_p9 = pnand %p2890_p10, %p2884_p1 }
 0x290   : > { %2894 = shalt.err (!%p2891_p9)
}
 0x291   : > { %s2895_s22 = scalar_lea.hbm %s3969_s3, 128  ;;  %s2899_s23 = scalar_lea.hbm %s4090_s1, 256 }
 0x292   : > { %p2896_p6 = scmp.ne.s32.totalorder %s3969_s3, %s2895_s22  ;;  %p2900_p13 = scmp.lt.u32.totalorder %s3969_s3, %s4090_s1 }
 0x293   : > { %p2901_p11 = scmp.lt.u32.totalorder %s2899_s23, %s2895_s22  ;;  %p2903_p4 = scmp.lt.u32.totalorder %s2895_s22, %s3969_s3 }
 0x294   : > { %p2897_p5 = pnand %p2896_p6, %p4089_p0 }
 0x295   : > { %p2902_p3 = por %p2901_p11, %p2900_p13 }
 0x296   : > { %p2898_p12 = pneg %p2897_p5 }
 0x297   : > { %p2904_p7 = por %p2903_p4, %p2902_p3 }
 0x299   : > { %p2905_p1 = pnand %p2904_p7, %p2898_p12 }
 0x29b   : > { %2908 = shalt.err (!%p2905_p1)
}
 0x29c   : > { %2618 = dma.vmem_to_hbm [thread:$0]  (%p4089_p0), %s2292_s21, 128, %s3969_s3, %s2259_s9  }
 0x29d PF: > { %p2639_p2 = scmp.ge.s32.totalorder %s3011_s25, 2  ;;  %s2303_s24 = sand.u32 1, %s2983_s18  }
 0x29e   : > { %p4091_p8 = scmp.ne.s32.totalorder %s4071_s11, 0  ;;  %s2304_s15 = scalar_lea.sflag [#allocation6], %s2303_s24 }
 0x2a0   : > { %p2632_p10 = pnand %p2639_p2, %p4091_p8 }
 0x2a2   : > { %2962 = dma.done.wait (!%p2632_p10), %s2304_s15, 128  }
 0x2a3   : > { %2964 = vsyncadd (!%p2632_p10), %s2304_s15, 4294967168  ;;  %s2313_s6 = scalar_lea.sflag [#allocation12], %s2303_s24 }
 0x2a4   : > { %2966 = dma.done.wait (!%p2632_p10), %s2313_s6, 128  }
 0x2a5   : > { %2968 = vsyncadd (!%p2632_p10), %s2313_s6, 4294967168  ;;  %s27_s25 = sadd.s32 1, %s3011_s25   ;;  %s4092_s28 = sld [smem:[#allocation17_spill]] }
 0x2a6   : > { %p24_p9 = scmp.ge.s32.totalorder %s27_s25, 6   ;;  %s4093_s17 = sld [smem:[#allocation23_spill]] }
 0x2a7   : > { %s4094_s29 = sld [smem:[#allocation22_spill]]  ;;  %s4095_s21 = sld [smem:[#allocation18_spill]] }
 0x2a8   : > { %s4096_s22 = sld [smem:[#allocation19_spill]]  ;;  %s4097_s23 = sld [smem:[#allocation20_spill]] }
 0x2a9   : > { %s4098_s24 = sld [smem:[#allocation21_spill]]  ;;  %s4099_s15 = smov %s2975_s16 }
 0x2aa   : > { %s4101_s18 = smov %s2987_s19  ;;  %s4102_s19 = smov %s2991_s20 }
 0x2ab   : > { %s4100_s16 = smov %s4092_s28  ;;  %26 = sbr.rel (!%p24_p9) target bundleno = 18 (0x12), region = 126 }
 0x2ad   : > { %s4103_s20 = smov %s4094_s29 }
 0x2b2   :  { %2318 = vsyncpa [#allocation5], 1 }
 0x2b3   :  { %2320 = vsyncpa [#allocation5 + $0x1], 1 }
 0x2b4   :  { %2321 = vsyncpa [#allocation8], 1 }
 0x2b5   :  { %2323 = vsyncpa [#allocation8 + $0x1], 1 }
 0x2b6   :  { %2324 = vsyncpa [#allocation6], 1 }
 0x2b7   :  { %2326 = vsyncpa [#allocation6 + $0x1], 1 }
 0x2b8   :  { %2327 = vsyncpa [#allocation12], 1 }
 0x2b9   :  { %2329 = vsyncpa [#allocation12 + $0x1], 1 }

</bundles_post_ra>
